<compile_context>
chip_gen: v6e
topology: v6e:2x2x1
jax: 0.10.0
libtpu: 0.0.40
codegen_flags: <defaults>
</compile_context>

<pallas_src>
import functools
import numpy as np
import jax
import jax.numpy as jnp
from jax.experimental import pallas as pl
from jax.experimental.pallas import tpu as pltpu  # noqa: F401  (TPU backend import)


# ------------------------------- fused kernel --------------------------------

def seq2seq_kernel(inp_ref, etok_ref, dtok_ref,
                   embi_ref, embo_ref,
                   ewih_ref, ewhh_ref, ebih_ref, ebhh_ref,
                   dsw_ref, dsb_ref,
                   dwih_ref, dwhh_ref, dbih_ref, dbhh_ref,
                   wlog_ref, blog_ref,
                   out_ref, *, eos_ix, bos_ix):
    """Whole forward pass, one invocation, no grid (everything resident in VMEM).

    inp_ref  : (B, T_in)       int32  raw encoder tokens (for length computation)
    etok_ref : (T_in*B, 1)     int32  encoder tokens, time-major flat
    dtok_ref : (T_dec*B, 1)    int32  decoder (teacher-forcing) tokens, time-major flat
    emb*_ref : (V, E)          f32    embedding tables
    weights  : (in, out) f32; biases (1, out)
    out_ref  : (T_out*B, V)    f32    [BOS rows ; per-step log(softmax+1e-9) rows], time-major
    """
    f32 = jnp.float32
    B, T_in = inp_ref.shape
    T_dec = dtok_ref.shape[0] // B
    V_in, _ = embi_ref.shape
    V_emb_out = embo_ref.shape[0]
    V_out = wlog_ref.shape[1]
    H = ewhh_ref.shape[0]

    def gru_step(gi, h, whh, b_rz, bi_n, bh_n):
        """PyTorch GRU/GRUCell update (gate order r,z,n) with gi = x @ Wih precomputed."""
        gh = jnp.dot(h, whh, preferred_element_type=f32)
        rz = jax.nn.sigmoid(gi[:, :2 * H] + gh[:, :2 * H] + b_rz)
        r, z = rz[:, :H], rz[:, H:]
        n = jnp.tanh(gi[:, 2 * H:] + bi_n + r * (gh[:, 2 * H:] + bh_n))
        return (1.0 - z) * n + z * h

    # ---- #1/#4: in-kernel embedding "gather" (exact one-hot matmul) + hoisted x@Wih ----
    oh_e = (jax.lax.broadcasted_iota(jnp.int32, (T_in * B, V_in), 1)
            == etok_ref[...]).astype(f32)
    x_e = jnp.dot(oh_e, embi_ref[...], preferred_element_type=f32)        # (T_in*B, E)
    gi_e = jnp.dot(x_e, ewih_ref[...], preferred_element_type=f32)        # (T_in*B, 3H)

    oh_d = (jax.lax.broadcasted_iota(jnp.int32, (T_dec * B, V_emb_out), 1)
            == dtok_ref[...]).astype(f32)
    x_d = jnp.dot(oh_d, embo_ref[...], preferred_element_type=f32)        # (T_dec*B, E)
    gi_d = jnp.dot(x_d, dwih_ref[...], preferred_element_type=f32)        # (T_dec*B, 3H)

    # ---- gate biases: r/z pre-summed; n kept split because of r * (gh_n + bhh_n) ----
    e_bih, e_bhh = ebih_ref[...], ebhh_ref[...]
    d_bih, d_bhh = dbih_ref[...], dbhh_ref[...]
    e_b_rz = e_bih[:, :2 * H] + e_bhh[:, :2 * H]
    e_bi_n, e_bh_n = e_bih[:, 2 * H:], e_bhh[:, 2 * H:]
    d_b_rz = d_bih[:, :2 * H] + d_bhh[:, :2 * H]
    d_bi_n, d_bh_n = d_bih[:, 2 * H:], d_bhh[:, 2 * H:]

    # ---- #4: encoder lengths computed in-kernel, clamp adjacent to its use ----
    non_eos = (inp_ref[...] != eos_ix).astype(f32)                        # (B, T_in)
    lengths = jnp.minimum(jnp.sum(non_eos, axis=1, keepdims=True),
                          T_in - 1).astype(jnp.int32)                     # (B, 1)

    # ---- encoder recurrence: only h @ Whh per step; keep state at t == length ----
    e_whh = ewhh_ref[...]
    h = jnp.zeros((B, H), f32)
    last_state = jnp.zeros((B, H), f32)
    for t in range(T_in):
        h = gru_step(gi_e[t * B:(t + 1) * B, :], h, e_whh, e_b_rz, e_bi_n, e_bh_n)
        last_state = jnp.where(lengths == t, h, last_state)

    # ---- dec_start linear (single-use weights read at point of use) ----
    state = jnp.dot(last_state, dsw_ref[...], preferred_element_type=f32) + dsb_ref[...]

    # ---- decoder recurrence: pure GRUCell chain, states collected ----
    d_whh = dwhh_ref[...]
    states = []
    for t in range(T_dec):
        state = gru_step(gi_d[t * B:(t + 1) * B, :], state, d_whh, d_b_rz, d_bi_n, d_bh_n)
        states.append(state)

    # ---- #2: one batched logits matmul + one batched log(softmax + 1e-9) ----
    s_all = jnp.concatenate(states, axis=0)                               # (T_dec*B, H)
    logits = jnp.dot(s_all, wlog_ref[...], preferred_element_type=f32) + blog_ref[...]
    m = jnp.max(logits, axis=-1, keepdims=True)
    e = jnp.exp(logits - m)
    # exact reciprocal kept for parity with the f32 reference (approx=True is available).
    p = e * pl.reciprocal(jnp.sum(e, axis=-1, keepdims=True), approx=False)
    logp = jnp.log(p + 1e-9)                                              # (T_dec*B, V)

    # ---- #3/#4: BOS log-one-hot row built in-kernel; ONE contiguous store ----
    bos_oh = (jax.lax.broadcasted_iota(jnp.int32, (B, V_out), 1) == bos_ix).astype(f32)
    bos_row = jnp.log(bos_oh + 1e-9)                                      # (B, V)
    out_ref[...] = jnp.concatenate([bos_row, logp], axis=0)               # (T_out*B, V)


# ------------------------------ model forward --------------------------------

def basic_model_forward(params, inp, out_tokens, *, eos_ix, bos_ix):
    B, T_in = inp.shape
    T_out = out_tokens.shape[1]
    T_dec = T_out - 1
    V_out = params["logits_w"].shape[1]

    # Only integer plumbing stays in the wrapper: tiny token transposes/flattens (time-major).
    inp_i32 = inp.astype(jnp.int32)
    enc_tok_tm = inp_i32.T.reshape(T_in * B, 1)
    dec_tok_tm = out_tokens[:, :-1].astype(jnp.int32).T.reshape(T_dec * B, 1)

    kernel = functools.partial(seq2seq_kernel, eos_ix=eos_ix, bos_ix=bos_ix)

    flat = pl.pallas_call(
        kernel,
        out_shape=jax.ShapeDtypeStruct((T_out * B, V_out), jnp.float32),
    )(inp_i32, enc_tok_tm, dec_tok_tm,
      params["emb_inp"], params["emb_out"],
      params["enc_wih"], params["enc_whh"], params["enc_bih"], params["enc_bhh"],
      params["dec_start_w"], params["dec_start_b"],
      params["dec_wih"], params["dec_whh"], params["dec_bih"], params["dec_bhh"],
      params["logits_w"], params["logits_b"])

    # Flat time-major (T_out*B, V) -> (B, T_out, V); reshape is free, transpose is 1 KB.
    return flat.reshape(T_out, B, V_out).transpose(1, 0, 2)


# --------------------------- pure-JAX reference -------------------------------

def reference_forward(params, inp, out_tokens, *, eos_ix, bos_ix):
    H = params["enc_whh"].shape[0]

    def gru(x, h, wih, whh, bih, bhh):
        gi = x @ wih + bih
        gh = h @ whh + bhh
        r = jax.nn.sigmoid(gi[:, :H] + gh[:, :H])
        z = jax.nn.sigmoid(gi[:, H:2 * H] + gh[:, H:2 * H])
        n = jnp.tanh(gi[:, 2 * H:] + r * gh[:, 2 * H:])
        return (1.0 - z) * n + z * h

    B, T_in = inp.shape
    inp_emb = params["emb_inp"][inp]
    h = jnp.zeros((B, H), jnp.float32)
    seq = []
    for t in range(T_in):
        h = gru(inp_emb[:, t], h, params["enc_wih"], params["enc_whh"],
                params["enc_bih"], params["enc_bhh"])
        seq.append(h)
    enc_seq = jnp.stack(seq, axis=1)
    lengths = jnp.minimum(jnp.sum((inp != eos_ix).astype(jnp.int32), axis=1), T_in - 1)
    last_state = enc_seq[jnp.arange(B), lengths]
    state = last_state @ params["dec_start_w"] + params["dec_start_b"]

    V_out = params["logits_w"].shape[1]
    onehot_bos = jax.nn.one_hot(jnp.full((B,), bos_ix, dtype=jnp.int32), V_out,
                                dtype=jnp.float32)
    logits_seq = [jnp.log(onehot_bos + 1e-9)]
    for i in range(out_tokens.shape[1] - 1):
        x = params["emb_out"][out_tokens[:, i]]
        state = gru(x, state, params["dec_wih"], params["dec_whh"],
                    params["dec_bih"], params["dec_bhh"])
        logits = state @ params["logits_w"] + params["logits_b"]
        p = jax.nn.softmax(logits, axis=-1)
        logits_seq.append(jnp.log(p + 1e-9))
    return jnp.stack(logits_seq, axis=1)


# ----------------------------------- main -------------------------------------

def init_params(key, v_in, v_out, emb_size, hid_size):
    ks = jax.random.split(key, 12)
    k = 1.0 / np.sqrt(hid_size)
    u = lambda kk, shape, bound: jax.random.uniform(kk, shape, jnp.float32, -bound, bound)
    return {
        "emb_inp": 0.1 * jax.random.normal(ks[0], (v_in, emb_size), jnp.float32),
        "emb_out": 0.1 * jax.random.normal(ks[1], (v_out, emb_size), jnp.float32),
        # encoder GRU (weights stored as (in, 3H))
        "enc_wih": u(ks[2], (emb_size, 3 * hid_size), k),
        "enc_whh": u(ks[3], (hid_size, 3 * hid_size), k),
        "enc_bih": u(ks[4], (1, 3 * hid_size), k),
        "enc_bhh": u(ks[5], (1, 3 * hid_size), k),
        # dec_start linear (in, out)
        "dec_start_w": u(ks[6], (hid_size, hid_size), k),
        "dec_start_b": u(ks[7], (1, hid_size), k),
        # decoder GRUCell
        "dec_wih": u(ks[8], (emb_size, 3 * hid_size), k),
        "dec_whh": u(ks[9], (hid_size, 3 * hid_size), k),
        "dec_bih": u(ks[10], (1, 3 * hid_size), k),
        "dec_bhh": u(ks[11], (1, 3 * hid_size), k),
        # logits linear
        "logits_w": u(jax.random.fold_in(key, 100), (hid_size, v_out), k),
        "logits_b": u(jax.random.fold_in(key, 101), (1, v_out), k),
    }


if __name__ == "__main__":
    BATCH, T_IN, T_OUT = 2, 8, 8
    V_IN, V_OUT = 16, 16
    EMB, HID = 32, 32
    BOS_IX, EOS_IX = 1, 2     # vocab special-token indices (stand-in for inp_voc/out_voc)

    key = jax.random.PRNGKey(0)
    kp, ki, ko = jax.random.split(key, 3)
    params = init_params(kp, V_IN, V_OUT, EMB, HID)

    inp = jax.random.randint(ki, (BATCH, T_IN), 0, V_IN, dtype=jnp.int32)
    out = jax.random.randint(ko, (BATCH, T_OUT), 0, V_OUT, dtype=jnp.int32)

    fwd = jax.jit(functools.partial(basic_model_forward, eos_ix=EOS_IX, bos_ix=BOS_IX))
    result = jax.block_until_ready(fwd(params, inp, out))
    assert result.shape == (BATCH, T_OUT, V_OUT)

    ref = jax.block_until_ready(reference_forward(params, inp, out,
                                                  eos_ix=EOS_IX, bos_ix=BOS_IX))
    np.testing.assert_allclose(np.asarray(result), np.asarray(ref), atol=5e-3, rtol=5e-3)

    print("KERNEL_OK")
</pallas_src>

<mosaic_0001>
module attributes {stable_mosaic.version = 11 : i64} {
  func.func @seq2seq_kernel(%arg0: memref<2x8xi32, #tpu.memory_space<vmem>>, %arg1: memref<16x1xi32, #tpu.memory_space<vmem>>, %arg2: memref<14x1xi32, #tpu.memory_space<vmem>>, %arg3: memref<16x32xf32, #tpu.memory_space<vmem>>, %arg4: memref<16x32xf32, #tpu.memory_space<vmem>>, %arg5: memref<32x96xf32, #tpu.memory_space<vmem>>, %arg6: memref<32x96xf32, #tpu.memory_space<vmem>>, %arg7: memref<1x96xf32, #tpu.memory_space<vmem>>, %arg8: memref<1x96xf32, #tpu.memory_space<vmem>>, %arg9: memref<32x32xf32, #tpu.memory_space<vmem>>, %arg10: memref<1x32xf32, #tpu.memory_space<vmem>>, %arg11: memref<32x96xf32, #tpu.memory_space<vmem>>, %arg12: memref<32x96xf32, #tpu.memory_space<vmem>>, %arg13: memref<1x96xf32, #tpu.memory_space<vmem>>, %arg14: memref<1x96xf32, #tpu.memory_space<vmem>>, %arg15: memref<32x16xf32, #tpu.memory_space<vmem>>, %arg16: memref<1x16xf32, #tpu.memory_space<vmem>>, %arg17: memref<16x16xf32, #tpu.memory_space<vmem>>) attributes {dimension_semantics = [], scalar_prefetch = 0 : i64, scratch_operands = 0 : i64, tpu.core_type = #tpu.core_type<tc>} {
    %0 = tpu.iota {dimensions = array<i32: 1>} : vector<16x16xi32>
    %c0 = arith.constant 0 : index
    %c0_0 = arith.constant 0 : index
    %1 = vector.load %arg1[%c0, %c0_0] : memref<16x1xi32, #tpu.memory_space<vmem>>, vector<16x1xi32>
    %2 = vector.broadcast %1 : vector<16x1xi32> to vector<16x16xi32>
    %3 = arith.cmpi eq, %0, %2 : vector<16x16xi32>
    %4 = arith.extui %3 : vector<16x16xi1> to vector<16x16xi32>
    %5 = arith.sitofp %4 : vector<16x16xi32> to vector<16x16xf32>
    %c0_1 = arith.constant 0 : index
    %c0_2 = arith.constant 0 : index
    %6 = vector.load %arg3[%c0_1, %c0_2] : memref<16x32xf32, #tpu.memory_space<vmem>>, vector<16x32xf32>
    %cst = arith.constant dense<0.000000e+00> : vector<16x32xf32>
    %7 = tpu.matmul %5, %6, %cst {dimension_numbers = #tpu.dot_dimension_numbers<[1], [0], [0], [1], [0, 0, 1, 1], [], []>} : vector<16x16xf32>, vector<16x32xf32>, vector<16x32xf32> -> vector<16x32xf32>
    %c0_3 = arith.constant 0 : index
    %c0_4 = arith.constant 0 : index
    %8 = vector.load %arg5[%c0_3, %c0_4] : memref<32x96xf32, #tpu.memory_space<vmem>>, vector<32x96xf32>
    %cst_5 = arith.constant dense<0.000000e+00> : vector<16x96xf32>
    %9 = tpu.matmul %7, %8, %cst_5 {dimension_numbers = #tpu.dot_dimension_numbers<[1], [0], [0], [1], [0, 0, 1, 1], [], []>} : vector<16x32xf32>, vector<32x96xf32>, vector<16x96xf32> -> vector<16x96xf32>
    %10 = tpu.iota {dimensions = array<i32: 1>} : vector<14x16xi32>
    %c0_6 = arith.constant 0 : index
    %c0_7 = arith.constant 0 : index
    %11 = vector.load %arg2[%c0_6, %c0_7] : memref<14x1xi32, #tpu.memory_space<vmem>>, vector<14x1xi32>
    %12 = vector.broadcast %11 : vector<14x1xi32> to vector<14x16xi32>
    %13 = arith.cmpi eq, %10, %12 : vector<14x16xi32>
    %14 = arith.extui %13 : vector<14x16xi1> to vector<14x16xi32>
    %15 = arith.sitofp %14 : vector<14x16xi32> to vector<14x16xf32>
    %c0_8 = arith.constant 0 : index
    %c0_9 = arith.constant 0 : index
    %16 = vector.load %arg4[%c0_8, %c0_9] : memref<16x32xf32, #tpu.memory_space<vmem>>, vector<16x32xf32>
    %cst_10 = arith.constant dense<0.000000e+00> : vector<14x32xf32>
    %17 = tpu.matmul %15, %16, %cst_10 {dimension_numbers = #tpu.dot_dimension_numbers<[1], [0], [0], [1], [0, 0, 1, 1], [], []>} : vector<14x16xf32>, vector<16x32xf32>, vector<14x32xf32> -> vector<14x32xf32>
    %c0_11 = arith.constant 0 : index
    %c0_12 = arith.constant 0 : index
    %18 = vector.load %arg11[%c0_11, %c0_12] : memref<32x96xf32, #tpu.memory_space<vmem>>, vector<32x96xf32>
    %cst_13 = arith.constant dense<0.000000e+00> : vector<14x96xf32>
    %19 = tpu.matmul %17, %18, %cst_13 {dimension_numbers = #tpu.dot_dimension_numbers<[1], [0], [0], [1], [0, 0, 1, 1], [], []>} : vector<14x32xf32>, vector<32x96xf32>, vector<14x96xf32> -> vector<14x96xf32>
    %c0_14 = arith.constant 0 : index
    %c0_15 = arith.constant 0 : index
    %20 = vector.load %arg7[%c0_14, %c0_15] : memref<1x96xf32, #tpu.memory_space<vmem>>, vector<1x96xf32>
    %c0_16 = arith.constant 0 : index
    %c0_17 = arith.constant 0 : index
    %21 = vector.load %arg8[%c0_16, %c0_17] : memref<1x96xf32, #tpu.memory_space<vmem>>, vector<1x96xf32>
    %c0_18 = arith.constant 0 : index
    %c0_19 = arith.constant 0 : index
    %22 = vector.load %arg13[%c0_18, %c0_19] : memref<1x96xf32, #tpu.memory_space<vmem>>, vector<1x96xf32>
    %c0_20 = arith.constant 0 : index
    %c0_21 = arith.constant 0 : index
    %23 = vector.load %arg14[%c0_20, %c0_21] : memref<1x96xf32, #tpu.memory_space<vmem>>, vector<1x96xf32>
    %24 = vector.extract_strided_slice %20 {offsets = [0, 0], sizes = [1, 64], strides = [1, 1]} : vector<1x96xf32> to vector<1x64xf32>
    %25 = vector.extract_strided_slice %21 {offsets = [0, 0], sizes = [1, 64], strides = [1, 1]} : vector<1x96xf32> to vector<1x64xf32>
    %26 = arith.addf %24, %25 : vector<1x64xf32>
    %27 = vector.extract_strided_slice %20 {offsets = [0, 64], sizes = [1, 32], strides = [1, 1]} : vector<1x96xf32> to vector<1x32xf32>
    %28 = vector.extract_strided_slice %21 {offsets = [0, 64], sizes = [1, 32], strides = [1, 1]} : vector<1x96xf32> to vector<1x32xf32>
    %29 = vector.extract_strided_slice %22 {offsets = [0, 0], sizes = [1, 64], strides = [1, 1]} : vector<1x96xf32> to vector<1x64xf32>
    %30 = vector.extract_strided_slice %23 {offsets = [0, 0], sizes = [1, 64], strides = [1, 1]} : vector<1x96xf32> to vector<1x64xf32>
    %31 = arith.addf %29, %30 : vector<1x64xf32>
    %32 = vector.extract_strided_slice %22 {offsets = [0, 64], sizes = [1, 32], strides = [1, 1]} : vector<1x96xf32> to vector<1x32xf32>
    %33 = vector.extract_strided_slice %23 {offsets = [0, 64], sizes = [1, 32], strides = [1, 1]} : vector<1x96xf32> to vector<1x32xf32>
    %c0_22 = arith.constant 0 : index
    %c0_23 = arith.constant 0 : index
    %34 = vector.load %arg0[%c0_22, %c0_23] : memref<2x8xi32, #tpu.memory_space<vmem>>, vector<2x8xi32>
    %c2_i32 = arith.constant 2 : i32
    %35 = vector.broadcast %c2_i32 : i32 to vector<2x8xi32>
    %36 = arith.cmpi ne, %34, %35 : vector<2x8xi32>
    %37 = arith.extui %36 : vector<2x8xi1> to vector<2x8xi32>
    %38 = arith.sitofp %37 : vector<2x8xi32> to vector<2x8xf32>
    %cst_24 = arith.constant dense<0.000000e+00> : vector<2xf32>
    %39 = vector.multi_reduction <add>, %38, %cst_24 [1] : vector<2x8xf32> to vector<2xf32>
    %40 = vector.shape_cast %39 : vector<2xf32> to vector<2x1xf32>
    %cst_25 = arith.constant 7.000000e+00 : f32
    %41 = vector.broadcast %cst_25 : f32 to vector<2x1xf32>
    %42 = arith.minimumf %40, %41 : vector<2x1xf32>
    %43 = arith.fptosi %42 : vector<2x1xf32> to vector<2x1xi32>
    %c0_26 = arith.constant 0 : index
    %c0_27 = arith.constant 0 : index
    %44 = vector.load %arg6[%c0_26, %c0_27] : memref<32x96xf32, #tpu.memory_space<vmem>>, vector<32x96xf32>
    %cst_28 = arith.constant 0.000000e+00 : f32
    %45 = vector.broadcast %cst_28 : f32 to vector<2x32xf32>
    %cst_29 = arith.constant 0.000000e+00 : f32
    %46 = vector.broadcast %cst_29 : f32 to vector<2x32xf32>
    %47 = vector.extract_strided_slice %9 {offsets = [0, 0], sizes = [2, 96], strides = [1, 1]} : vector<16x96xf32> to vector<2x96xf32>
    %cst_30 = arith.constant dense<0.000000e+00> : vector<2x96xf32>
    %48 = tpu.matmul %45, %44, %cst_30 {dimension_numbers = #tpu.dot_dimension_numbers<[1], [0], [0], [1], [0, 0, 1, 1], [], []>} : vector<2x32xf32>, vector<32x96xf32>, vector<2x96xf32> -> vector<2x96xf32>
    %49 = vector.extract_strided_slice %47 {offsets = [0, 0], sizes = [2, 64], strides = [1, 1]} : vector<2x96xf32> to vector<2x64xf32>
    %50 = vector.extract_strided_slice %48 {offsets = [0, 0], sizes = [2, 64], strides = [1, 1]} : vector<2x96xf32> to vector<2x64xf32>
    %51 = arith.addf %49, %50 : vector<2x64xf32>
    %52 = vector.broadcast %26 : vector<1x64xf32> to vector<2x64xf32>
    %53 = arith.addf %51, %52 : vector<2x64xf32>
    %54 = arith.negf %53 : vector<2x64xf32>
    %55 = math.exp %54 : vector<2x64xf32>
    %cst_31 = arith.constant 1.000000e+00 : f32
    %56 = vector.broadcast %cst_31 : f32 to vector<2x64xf32>
    %57 = arith.addf %56, %55 : vector<2x64xf32>
    %58 = arith.divf %56, %57 : vector<2x64xf32>
    %59 = vector.extract_strided_slice %58 {offsets = [0, 0], sizes = [2, 32], strides = [1, 1]} : vector<2x64xf32> to vector<2x32xf32>
    %60 = vector.extract_strided_slice %58 {offsets = [0, 32], sizes = [2, 32], strides = [1, 1]} : vector<2x64xf32> to vector<2x32xf32>
    %61 = vector.extract_strided_slice %47 {offsets = [0, 64], sizes = [2, 32], strides = [1, 1]} : vector<2x96xf32> to vector<2x32xf32>
    %62 = vector.broadcast %27 : vector<1x32xf32> to vector<2x32xf32>
    %63 = arith.addf %61, %62 : vector<2x32xf32>
    %64 = vector.extract_strided_slice %48 {offsets = [0, 64], sizes = [2, 32], strides = [1, 1]} : vector<2x96xf32> to vector<2x32xf32>
    %65 = vector.broadcast %28 : vector<1x32xf32> to vector<2x32xf32>
    %66 = arith.addf %64, %65 : vector<2x32xf32>
    %67 = arith.mulf %59, %66 : vector<2x32xf32>
    %68 = arith.addf %63, %67 : vector<2x32xf32>
    %69 = math.tanh %68 : vector<2x32xf32>
    %cst_32 = arith.constant 1.000000e+00 : f32
    %70 = vector.broadcast %cst_32 : f32 to vector<2x32xf32>
    %71 = arith.subf %70, %60 : vector<2x32xf32>
    %72 = arith.mulf %71, %69 : vector<2x32xf32>
    %73 = arith.mulf %60, %45 : vector<2x32xf32>
    %74 = arith.addf %72, %73 : vector<2x32xf32>
    %c0_i32 = arith.constant 0 : i32
    %75 = vector.broadcast %c0_i32 : i32 to vector<2x1xi32>
    %76 = arith.cmpi eq, %43, %75 : vector<2x1xi32>
    %77 = vector.shape_cast %76 : vector<2x1xi1> to vector<2x1xi1>
    %78 = vector.broadcast %77 : vector<2x1xi1> to vector<2x32xi1>
    %79 = arith.select %78, %74, %46 : vector<2x32xi1>, vector<2x32xf32>
    %80 = vector.extract_strided_slice %9 {offsets = [2, 0], sizes = [2, 96], strides = [1, 1]} : vector<16x96xf32> to vector<2x96xf32>
    %cst_33 = arith.constant dense<0.000000e+00> : vector<2x96xf32>
    %81 = tpu.matmul %74, %44, %cst_33 {dimension_numbers = #tpu.dot_dimension_numbers<[1], [0], [0], [1], [0, 0, 1, 1], [], []>} : vector<2x32xf32>, vector<32x96xf32>, vector<2x96xf32> -> vector<2x96xf32>
    %82 = vector.extract_strided_slice %80 {offsets = [0, 0], sizes = [2, 64], strides = [1, 1]} : vector<2x96xf32> to vector<2x64xf32>
    %83 = vector.extract_strided_slice %81 {offsets = [0, 0], sizes = [2, 64], strides = [1, 1]} : vector<2x96xf32> to vector<2x64xf32>
    %84 = arith.addf %82, %83 : vector<2x64xf32>
    %85 = vector.broadcast %26 : vector<1x64xf32> to vector<2x64xf32>
    %86 = arith.addf %84, %85 : vector<2x64xf32>
    %87 = arith.negf %86 : vector<2x64xf32>
    %88 = math.exp %87 : vector<2x64xf32>
    %cst_34 = arith.constant 1.000000e+00 : f32
    %89 = vector.broadcast %cst_34 : f32 to vector<2x64xf32>
    %90 = arith.addf %89, %88 : vector<2x64xf32>
    %91 = arith.divf %89, %90 : vector<2x64xf32>
    %92 = vector.extract_strided_slice %91 {offsets = [0, 0], sizes = [2, 32], strides = [1, 1]} : vector<2x64xf32> to vector<2x32xf32>
    %93 = vector.extract_strided_slice %91 {offsets = [0, 32], sizes = [2, 32], strides = [1, 1]} : vector<2x64xf32> to vector<2x32xf32>
    %94 = vector.extract_strided_slice %80 {offsets = [0, 64], sizes = [2, 32], strides = [1, 1]} : vector<2x96xf32> to vector<2x32xf32>
    %95 = vector.broadcast %27 : vector<1x32xf32> to vector<2x32xf32>
    %96 = arith.addf %94, %95 : vector<2x32xf32>
    %97 = vector.extract_strided_slice %81 {offsets = [0, 64], sizes = [2, 32], strides = [1, 1]} : vector<2x96xf32> to vector<2x32xf32>
    %98 = vector.broadcast %28 : vector<1x32xf32> to vector<2x32xf32>
    %99 = arith.addf %97, %98 : vector<2x32xf32>
    %100 = arith.mulf %92, %99 : vector<2x32xf32>
    %101 = arith.addf %96, %100 : vector<2x32xf32>
    %102 = math.tanh %101 : vector<2x32xf32>
    %cst_35 = arith.constant 1.000000e+00 : f32
    %103 = vector.broadcast %cst_35 : f32 to vector<2x32xf32>
    %104 = arith.subf %103, %93 : vector<2x32xf32>
    %105 = arith.mulf %104, %102 : vector<2x32xf32>
    %106 = arith.mulf %93, %74 : vector<2x32xf32>
    %107 = arith.addf %105, %106 : vector<2x32xf32>
    %c1_i32 = arith.constant 1 : i32
    %108 = vector.broadcast %c1_i32 : i32 to vector<2x1xi32>
    %109 = arith.cmpi eq, %43, %108 : vector<2x1xi32>
    %110 = vector.shape_cast %109 : vector<2x1xi1> to vector<2x1xi1>
    %111 = vector.broadcast %110 : vector<2x1xi1> to vector<2x32xi1>
    %112 = arith.select %111, %107, %79 : vector<2x32xi1>, vector<2x32xf32>
    %113 = vector.extract_strided_slice %9 {offsets = [4, 0], sizes = [2, 96], strides = [1, 1]} : vector<16x96xf32> to vector<2x96xf32>
    %cst_36 = arith.constant dense<0.000000e+00> : vector<2x96xf32>
    %114 = tpu.matmul %107, %44, %cst_36 {dimension_numbers = #tpu.dot_dimension_numbers<[1], [0], [0], [1], [0, 0, 1, 1], [], []>} : vector<2x32xf32>, vector<32x96xf32>, vector<2x96xf32> -> vector<2x96xf32>
    %115 = vector.extract_strided_slice %113 {offsets = [0, 0], sizes = [2, 64], strides = [1, 1]} : vector<2x96xf32> to vector<2x64xf32>
    %116 = vector.extract_strided_slice %114 {offsets = [0, 0], sizes = [2, 64], strides = [1, 1]} : vector<2x96xf32> to vector<2x64xf32>
    %117 = arith.addf %115, %116 : vector<2x64xf32>
    %118 = vector.broadcast %26 : vector<1x64xf32> to vector<2x64xf32>
    %119 = arith.addf %117, %118 : vector<2x64xf32>
    %120 = arith.negf %119 : vector<2x64xf32>
    %121 = math.exp %120 : vector<2x64xf32>
    %cst_37 = arith.constant 1.000000e+00 : f32
    %122 = vector.broadcast %cst_37 : f32 to vector<2x64xf32>
    %123 = arith.addf %122, %121 : vector<2x64xf32>
    %124 = arith.divf %122, %123 : vector<2x64xf32>
    %125 = vector.extract_strided_slice %124 {offsets = [0, 0], sizes = [2, 32], strides = [1, 1]} : vector<2x64xf32> to vector<2x32xf32>
    %126 = vector.extract_strided_slice %124 {offsets = [0, 32], sizes = [2, 32], strides = [1, 1]} : vector<2x64xf32> to vector<2x32xf32>
    %127 = vector.extract_strided_slice %113 {offsets = [0, 64], sizes = [2, 32], strides = [1, 1]} : vector<2x96xf32> to vector<2x32xf32>
    %128 = vector.broadcast %27 : vector<1x32xf32> to vector<2x32xf32>
    %129 = arith.addf %127, %128 : vector<2x32xf32>
    %130 = vector.extract_strided_slice %114 {offsets = [0, 64], sizes = [2, 32], strides = [1, 1]} : vector<2x96xf32> to vector<2x32xf32>
    %131 = vector.broadcast %28 : vector<1x32xf32> to vector<2x32xf32>
    %132 = arith.addf %130, %131 : vector<2x32xf32>
    %133 = arith.mulf %125, %132 : vector<2x32xf32>
    %134 = arith.addf %129, %133 : vector<2x32xf32>
    %135 = math.tanh %134 : vector<2x32xf32>
    %cst_38 = arith.constant 1.000000e+00 : f32
    %136 = vector.broadcast %cst_38 : f32 to vector<2x32xf32>
    %137 = arith.subf %136, %126 : vector<2x32xf32>
    %138 = arith.mulf %137, %135 : vector<2x32xf32>
    %139 = arith.mulf %126, %107 : vector<2x32xf32>
    %140 = arith.addf %138, %139 : vector<2x32xf32>
    %c2_i32_39 = arith.constant 2 : i32
    %141 = vector.broadcast %c2_i32_39 : i32 to vector<2x1xi32>
    %142 = arith.cmpi eq, %43, %141 : vector<2x1xi32>
    %143 = vector.shape_cast %142 : vector<2x1xi1> to vector<2x1xi1>
    %144 = vector.broadcast %143 : vector<2x1xi1> to vector<2x32xi1>
    %145 = arith.select %144, %140, %112 : vector<2x32xi1>, vector<2x32xf32>
    %146 = vector.extract_strided_slice %9 {offsets = [6, 0], sizes = [2, 96], strides = [1, 1]} : vector<16x96xf32> to vector<2x96xf32>
    %cst_40 = arith.constant dense<0.000000e+00> : vector<2x96xf32>
    %147 = tpu.matmul %140, %44, %cst_40 {dimension_numbers = #tpu.dot_dimension_numbers<[1], [0], [0], [1], [0, 0, 1, 1], [], []>} : vector<2x32xf32>, vector<32x96xf32>, vector<2x96xf32> -> vector<2x96xf32>
    %148 = vector.extract_strided_slice %146 {offsets = [0, 0], sizes = [2, 64], strides = [1, 1]} : vector<2x96xf32> to vector<2x64xf32>
    %149 = vector.extract_strided_slice %147 {offsets = [0, 0], sizes = [2, 64], strides = [1, 1]} : vector<2x96xf32> to vector<2x64xf32>
    %150 = arith.addf %148, %149 : vector<2x64xf32>
    %151 = vector.broadcast %26 : vector<1x64xf32> to vector<2x64xf32>
    %152 = arith.addf %150, %151 : vector<2x64xf32>
    %153 = arith.negf %152 : vector<2x64xf32>
    %154 = math.exp %153 : vector<2x64xf32>
    %cst_41 = arith.constant 1.000000e+00 : f32
    %155 = vector.broadcast %cst_41 : f32 to vector<2x64xf32>
    %156 = arith.addf %155, %154 : vector<2x64xf32>
    %157 = arith.divf %155, %156 : vector<2x64xf32>
    %158 = vector.extract_strided_slice %157 {offsets = [0, 0], sizes = [2, 32], strides = [1, 1]} : vector<2x64xf32> to vector<2x32xf32>
    %159 = vector.extract_strided_slice %157 {offsets = [0, 32], sizes = [2, 32], strides = [1, 1]} : vector<2x64xf32> to vector<2x32xf32>
    %160 = vector.extract_strided_slice %146 {offsets = [0, 64], sizes = [2, 32], strides = [1, 1]} : vector<2x96xf32> to vector<2x32xf32>
    %161 = vector.broadcast %27 : vector<1x32xf32> to vector<2x32xf32>
    %162 = arith.addf %160, %161 : vector<2x32xf32>
    %163 = vector.extract_strided_slice %147 {offsets = [0, 64], sizes = [2, 32], strides = [1, 1]} : vector<2x96xf32> to vector<2x32xf32>
    %164 = vector.broadcast %28 : vector<1x32xf32> to vector<2x32xf32>
    %165 = arith.addf %163, %164 : vector<2x32xf32>
    %166 = arith.mulf %158, %165 : vector<2x32xf32>
    %167 = arith.addf %162, %166 : vector<2x32xf32>
    %168 = math.tanh %167 : vector<2x32xf32>
    %cst_42 = arith.constant 1.000000e+00 : f32
    %169 = vector.broadcast %cst_42 : f32 to vector<2x32xf32>
    %170 = arith.subf %169, %159 : vector<2x32xf32>
    %171 = arith.mulf %170, %168 : vector<2x32xf32>
    %172 = arith.mulf %159, %140 : vector<2x32xf32>
    %173 = arith.addf %171, %172 : vector<2x32xf32>
    %c3_i32 = arith.constant 3 : i32
    %174 = vector.broadcast %c3_i32 : i32 to vector<2x1xi32>
    %175 = arith.cmpi eq, %43, %174 : vector<2x1xi32>
    %176 = vector.shape_cast %175 : vector<2x1xi1> to vector<2x1xi1>
    %177 = vector.broadcast %176 : vector<2x1xi1> to vector<2x32xi1>
    %178 = arith.select %177, %173, %145 : vector<2x32xi1>, vector<2x32xf32>
    %179 = vector.extract_strided_slice %9 {offsets = [8, 0], sizes = [2, 96], strides = [1, 1]} : vector<16x96xf32> to vector<2x96xf32>
    %cst_43 = arith.constant dense<0.000000e+00> : vector<2x96xf32>
    %180 = tpu.matmul %173, %44, %cst_43 {dimension_numbers = #tpu.dot_dimension_numbers<[1], [0], [0], [1], [0, 0, 1, 1], [], []>} : vector<2x32xf32>, vector<32x96xf32>, vector<2x96xf32> -> vector<2x96xf32>
    %181 = vector.extract_strided_slice %179 {offsets = [0, 0], sizes = [2, 64], strides = [1, 1]} : vector<2x96xf32> to vector<2x64xf32>
    %182 = vector.extract_strided_slice %180 {offsets = [0, 0], sizes = [2, 64], strides = [1, 1]} : vector<2x96xf32> to vector<2x64xf32>
    %183 = arith.addf %181, %182 : vector<2x64xf32>
    %184 = vector.broadcast %26 : vector<1x64xf32> to vector<2x64xf32>
    %185 = arith.addf %183, %184 : vector<2x64xf32>
    %186 = arith.negf %185 : vector<2x64xf32>
    %187 = math.exp %186 : vector<2x64xf32>
    %cst_44 = arith.constant 1.000000e+00 : f32
    %188 = vector.broadcast %cst_44 : f32 to vector<2x64xf32>
    %189 = arith.addf %188, %187 : vector<2x64xf32>
    %190 = arith.divf %188, %189 : vector<2x64xf32>
    %191 = vector.extract_strided_slice %190 {offsets = [0, 0], sizes = [2, 32], strides = [1, 1]} : vector<2x64xf32> to vector<2x32xf32>
    %192 = vector.extract_strided_slice %190 {offsets = [0, 32], sizes = [2, 32], strides = [1, 1]} : vector<2x64xf32> to vector<2x32xf32>
    %193 = vector.extract_strided_slice %179 {offsets = [0, 64], sizes = [2, 32], strides = [1, 1]} : vector<2x96xf32> to vector<2x32xf32>
    %194 = vector.broadcast %27 : vector<1x32xf32> to vector<2x32xf32>
    %195 = arith.addf %193, %194 : vector<2x32xf32>
    %196 = vector.extract_strided_slice %180 {offsets = [0, 64], sizes = [2, 32], strides = [1, 1]} : vector<2x96xf32> to vector<2x32xf32>
    %197 = vector.broadcast %28 : vector<1x32xf32> to vector<2x32xf32>
    %198 = arith.addf %196, %197 : vector<2x32xf32>
    %199 = arith.mulf %191, %198 : vector<2x32xf32>
    %200 = arith.addf %195, %199 : vector<2x32xf32>
    %201 = math.tanh %200 : vector<2x32xf32>
    %cst_45 = arith.constant 1.000000e+00 : f32
    %202 = vector.broadcast %cst_45 : f32 to vector<2x32xf32>
    %203 = arith.subf %202, %192 : vector<2x32xf32>
    %204 = arith.mulf %203, %201 : vector<2x32xf32>
    %205 = arith.mulf %192, %173 : vector<2x32xf32>
    %206 = arith.addf %204, %205 : vector<2x32xf32>
    %c4_i32 = arith.constant 4 : i32
    %207 = vector.broadcast %c4_i32 : i32 to vector<2x1xi32>
    %208 = arith.cmpi eq, %43, %207 : vector<2x1xi32>
    %209 = vector.shape_cast %208 : vector<2x1xi1> to vector<2x1xi1>
    %210 = vector.broadcast %209 : vector<2x1xi1> to vector<2x32xi1>
    %211 = arith.select %210, %206, %178 : vector<2x32xi1>, vector<2x32xf32>
    %212 = vector.extract_strided_slice %9 {offsets = [10, 0], sizes = [2, 96], strides = [1, 1]} : vector<16x96xf32> to vector<2x96xf32>
    %cst_46 = arith.constant dense<0.000000e+00> : vector<2x96xf32>
    %213 = tpu.matmul %206, %44, %cst_46 {dimension_numbers = #tpu.dot_dimension_numbers<[1], [0], [0], [1], [0, 0, 1, 1], [], []>} : vector<2x32xf32>, vector<32x96xf32>, vector<2x96xf32> -> vector<2x96xf32>
    %214 = vector.extract_strided_slice %212 {offsets = [0, 0], sizes = [2, 64], strides = [1, 1]} : vector<2x96xf32> to vector<2x64xf32>
    %215 = vector.extract_strided_slice %213 {offsets = [0, 0], sizes = [2, 64], strides = [1, 1]} : vector<2x96xf32> to vector<2x64xf32>
    %216 = arith.addf %214, %215 : vector<2x64xf32>
    %217 = vector.broadcast %26 : vector<1x64xf32> to vector<2x64xf32>
    %218 = arith.addf %216, %217 : vector<2x64xf32>
    %219 = arith.negf %218 : vector<2x64xf32>
    %220 = math.exp %219 : vector<2x64xf32>
    %cst_47 = arith.constant 1.000000e+00 : f32
    %221 = vector.broadcast %cst_47 : f32 to vector<2x64xf32>
    %222 = arith.addf %221, %220 : vector<2x64xf32>
    %223 = arith.divf %221, %222 : vector<2x64xf32>
    %224 = vector.extract_strided_slice %223 {offsets = [0, 0], sizes = [2, 32], strides = [1, 1]} : vector<2x64xf32> to vector<2x32xf32>
    %225 = vector.extract_strided_slice %223 {offsets = [0, 32], sizes = [2, 32], strides = [1, 1]} : vector<2x64xf32> to vector<2x32xf32>
    %226 = vector.extract_strided_slice %212 {offsets = [0, 64], sizes = [2, 32], strides = [1, 1]} : vector<2x96xf32> to vector<2x32xf32>
    %227 = vector.broadcast %27 : vector<1x32xf32> to vector<2x32xf32>
    %228 = arith.addf %226, %227 : vector<2x32xf32>
    %229 = vector.extract_strided_slice %213 {offsets = [0, 64], sizes = [2, 32], strides = [1, 1]} : vector<2x96xf32> to vector<2x32xf32>
    %230 = vector.broadcast %28 : vector<1x32xf32> to vector<2x32xf32>
    %231 = arith.addf %229, %230 : vector<2x32xf32>
    %232 = arith.mulf %224, %231 : vector<2x32xf32>
    %233 = arith.addf %228, %232 : vector<2x32xf32>
    %234 = math.tanh %233 : vector<2x32xf32>
    %cst_48 = arith.constant 1.000000e+00 : f32
    %235 = vector.broadcast %cst_48 : f32 to vector<2x32xf32>
    %236 = arith.subf %235, %225 : vector<2x32xf32>
    %237 = arith.mulf %236, %234 : vector<2x32xf32>
    %238 = arith.mulf %225, %206 : vector<2x32xf32>
    %239 = arith.addf %237, %238 : vector<2x32xf32>
    %c5_i32 = arith.constant 5 : i32
    %240 = vector.broadcast %c5_i32 : i32 to vector<2x1xi32>
    %241 = arith.cmpi eq, %43, %240 : vector<2x1xi32>
    %242 = vector.shape_cast %241 : vector<2x1xi1> to vector<2x1xi1>
    %243 = vector.broadcast %242 : vector<2x1xi1> to vector<2x32xi1>
    %244 = arith.select %243, %239, %211 : vector<2x32xi1>, vector<2x32xf32>
    %245 = vector.extract_strided_slice %9 {offsets = [12, 0], sizes = [2, 96], strides = [1, 1]} : vector<16x96xf32> to vector<2x96xf32>
    %cst_49 = arith.constant dense<0.000000e+00> : vector<2x96xf32>
    %246 = tpu.matmul %239, %44, %cst_49 {dimension_numbers = #tpu.dot_dimension_numbers<[1], [0], [0], [1], [0, 0, 1, 1], [], []>} : vector<2x32xf32>, vector<32x96xf32>, vector<2x96xf32> -> vector<2x96xf32>
    %247 = vector.extract_strided_slice %245 {offsets = [0, 0], sizes = [2, 64], strides = [1, 1]} : vector<2x96xf32> to vector<2x64xf32>
    %248 = vector.extract_strided_slice %246 {offsets = [0, 0], sizes = [2, 64], strides = [1, 1]} : vector<2x96xf32> to vector<2x64xf32>
    %249 = arith.addf %247, %248 : vector<2x64xf32>
    %250 = vector.broadcast %26 : vector<1x64xf32> to vector<2x64xf32>
    %251 = arith.addf %249, %250 : vector<2x64xf32>
    %252 = arith.negf %251 : vector<2x64xf32>
    %253 = math.exp %252 : vector<2x64xf32>
    %cst_50 = arith.constant 1.000000e+00 : f32
    %254 = vector.broadcast %cst_50 : f32 to vector<2x64xf32>
    %255 = arith.addf %254, %253 : vector<2x64xf32>
    %256 = arith.divf %254, %255 : vector<2x64xf32>
    %257 = vector.extract_strided_slice %256 {offsets = [0, 0], sizes = [2, 32], strides = [1, 1]} : vector<2x64xf32> to vector<2x32xf32>
    %258 = vector.extract_strided_slice %256 {offsets = [0, 32], sizes = [2, 32], strides = [1, 1]} : vector<2x64xf32> to vector<2x32xf32>
    %259 = vector.extract_strided_slice %245 {offsets = [0, 64], sizes = [2, 32], strides = [1, 1]} : vector<2x96xf32> to vector<2x32xf32>
    %260 = vector.broadcast %27 : vector<1x32xf32> to vector<2x32xf32>
    %261 = arith.addf %259, %260 : vector<2x32xf32>
    %262 = vector.extract_strided_slice %246 {offsets = [0, 64], sizes = [2, 32], strides = [1, 1]} : vector<2x96xf32> to vector<2x32xf32>
    %263 = vector.broadcast %28 : vector<1x32xf32> to vector<2x32xf32>
    %264 = arith.addf %262, %263 : vector<2x32xf32>
    %265 = arith.mulf %257, %264 : vector<2x32xf32>
    %266 = arith.addf %261, %265 : vector<2x32xf32>
    %267 = math.tanh %266 : vector<2x32xf32>
    %cst_51 = arith.constant 1.000000e+00 : f32
    %268 = vector.broadcast %cst_51 : f32 to vector<2x32xf32>
    %269 = arith.subf %268, %258 : vector<2x32xf32>
    %270 = arith.mulf %269, %267 : vector<2x32xf32>
    %271 = arith.mulf %258, %239 : vector<2x32xf32>
    %272 = arith.addf %270, %271 : vector<2x32xf32>
    %c6_i32 = arith.constant 6 : i32
    %273 = vector.broadcast %c6_i32 : i32 to vector<2x1xi32>
    %274 = arith.cmpi eq, %43, %273 : vector<2x1xi32>
    %275 = vector.shape_cast %274 : vector<2x1xi1> to vector<2x1xi1>
    %276 = vector.broadcast %275 : vector<2x1xi1> to vector<2x32xi1>
    %277 = arith.select %276, %272, %244 : vector<2x32xi1>, vector<2x32xf32>
    %278 = vector.extract_strided_slice %9 {offsets = [14, 0], sizes = [2, 96], strides = [1, 1]} : vector<16x96xf32> to vector<2x96xf32>
    %cst_52 = arith.constant dense<0.000000e+00> : vector<2x96xf32>
    %279 = tpu.matmul %272, %44, %cst_52 {dimension_numbers = #tpu.dot_dimension_numbers<[1], [0], [0], [1], [0, 0, 1, 1], [], []>} : vector<2x32xf32>, vector<32x96xf32>, vector<2x96xf32> -> vector<2x96xf32>
    %280 = vector.extract_strided_slice %278 {offsets = [0, 0], sizes = [2, 64], strides = [1, 1]} : vector<2x96xf32> to vector<2x64xf32>
    %281 = vector.extract_strided_slice %279 {offsets = [0, 0], sizes = [2, 64], strides = [1, 1]} : vector<2x96xf32> to vector<2x64xf32>
    %282 = arith.addf %280, %281 : vector<2x64xf32>
    %283 = vector.broadcast %26 : vector<1x64xf32> to vector<2x64xf32>
    %284 = arith.addf %282, %283 : vector<2x64xf32>
    %285 = arith.negf %284 : vector<2x64xf32>
    %286 = math.exp %285 : vector<2x64xf32>
    %cst_53 = arith.constant 1.000000e+00 : f32
    %287 = vector.broadcast %cst_53 : f32 to vector<2x64xf32>
    %288 = arith.addf %287, %286 : vector<2x64xf32>
    %289 = arith.divf %287, %288 : vector<2x64xf32>
    %290 = vector.extract_strided_slice %289 {offsets = [0, 0], sizes = [2, 32], strides = [1, 1]} : vector<2x64xf32> to vector<2x32xf32>
    %291 = vector.extract_strided_slice %289 {offsets = [0, 32], sizes = [2, 32], strides = [1, 1]} : vector<2x64xf32> to vector<2x32xf32>
    %292 = vector.extract_strided_slice %278 {offsets = [0, 64], sizes = [2, 32], strides = [1, 1]} : vector<2x96xf32> to vector<2x32xf32>
    %293 = vector.broadcast %27 : vector<1x32xf32> to vector<2x32xf32>
    %294 = arith.addf %292, %293 : vector<2x32xf32>
    %295 = vector.extract_strided_slice %279 {offsets = [0, 64], sizes = [2, 32], strides = [1, 1]} : vector<2x96xf32> to vector<2x32xf32>
    %296 = vector.broadcast %28 : vector<1x32xf32> to vector<2x32xf32>
    %297 = arith.addf %295, %296 : vector<2x32xf32>
    %298 = arith.mulf %290, %297 : vector<2x32xf32>
    %299 = arith.addf %294, %298 : vector<2x32xf32>
    %300 = math.tanh %299 : vector<2x32xf32>
    %cst_54 = arith.constant 1.000000e+00 : f32
    %301 = vector.broadcast %cst_54 : f32 to vector<2x32xf32>
    %302 = arith.subf %301, %291 : vector<2x32xf32>
    %303 = arith.mulf %302, %300 : vector<2x32xf32>
    %304 = arith.mulf %291, %272 : vector<2x32xf32>
    %305 = arith.addf %303, %304 : vector<2x32xf32>
    %c7_i32 = arith.constant 7 : i32
    %306 = vector.broadcast %c7_i32 : i32 to vector<2x1xi32>
    %307 = arith.cmpi eq, %43, %306 : vector<2x1xi32>
    %308 = vector.shape_cast %307 : vector<2x1xi1> to vector<2x1xi1>
    %309 = vector.broadcast %308 : vector<2x1xi1> to vector<2x32xi1>
    %310 = arith.select %309, %305, %277 : vector<2x32xi1>, vector<2x32xf32>
    %c0_55 = arith.constant 0 : index
    %c0_56 = arith.constant 0 : index
    %311 = vector.load %arg9[%c0_55, %c0_56] : memref<32x32xf32, #tpu.memory_space<vmem>>, vector<32x32xf32>
    %cst_57 = arith.constant dense<0.000000e+00> : vector<2x32xf32>
    %312 = tpu.matmul %310, %311, %cst_57 {dimension_numbers = #tpu.dot_dimension_numbers<[1], [0], [0], [1], [0, 0, 1, 1], [], []>} : vector<2x32xf32>, vector<32x32xf32>, vector<2x32xf32> -> vector<2x32xf32>
    %c0_58 = arith.constant 0 : index
    %c0_59 = arith.constant 0 : index
    %313 = vector.load %arg10[%c0_58, %c0_59] : memref<1x32xf32, #tpu.memory_space<vmem>>, vector<1x32xf32>
    %314 = vector.broadcast %313 : vector<1x32xf32> to vector<2x32xf32>
    %315 = arith.addf %312, %314 : vector<2x32xf32>
    %c0_60 = arith.constant 0 : index
    %c0_61 = arith.constant 0 : index
    %316 = vector.load %arg12[%c0_60, %c0_61] : memref<32x96xf32, #tpu.memory_space<vmem>>, vector<32x96xf32>
    %317 = vector.extract_strided_slice %19 {offsets = [0, 0], sizes = [2, 96], strides = [1, 1]} : vector<14x96xf32> to vector<2x96xf32>
    %cst_62 = arith.constant dense<0.000000e+00> : vector<2x96xf32>
    %318 = tpu.matmul %315, %316, %cst_62 {dimension_numbers = #tpu.dot_dimension_numbers<[1], [0], [0], [1], [0, 0, 1, 1], [], []>} : vector<2x32xf32>, vector<32x96xf32>, vector<2x96xf32> -> vector<2x96xf32>
    %319 = vector.extract_strided_slice %317 {offsets = [0, 0], sizes = [2, 64], strides = [1, 1]} : vector<2x96xf32> to vector<2x64xf32>
    %320 = vector.extract_strided_slice %318 {offsets = [0, 0], sizes = [2, 64], strides = [1, 1]} : vector<2x96xf32> to vector<2x64xf32>
    %321 = arith.addf %319, %320 : vector<2x64xf32>
    %322 = vector.broadcast %31 : vector<1x64xf32> to vector<2x64xf32>
    %323 = arith.addf %321, %322 : vector<2x64xf32>
    %324 = arith.negf %323 : vector<2x64xf32>
    %325 = math.exp %324 : vector<2x64xf32>
    %cst_63 = arith.constant 1.000000e+00 : f32
    %326 = vector.broadcast %cst_63 : f32 to vector<2x64xf32>
    %327 = arith.addf %326, %325 : vector<2x64xf32>
    %328 = arith.divf %326, %327 : vector<2x64xf32>
    %329 = vector.extract_strided_slice %328 {offsets = [0, 0], sizes = [2, 32], strides = [1, 1]} : vector<2x64xf32> to vector<2x32xf32>
    %330 = vector.extract_strided_slice %328 {offsets = [0, 32], sizes = [2, 32], strides = [1, 1]} : vector<2x64xf32> to vector<2x32xf32>
    %331 = vector.extract_strided_slice %317 {offsets = [0, 64], sizes = [2, 32], strides = [1, 1]} : vector<2x96xf32> to vector<2x32xf32>
    %332 = vector.broadcast %32 : vector<1x32xf32> to vector<2x32xf32>
    %333 = arith.addf %331, %332 : vector<2x32xf32>
    %334 = vector.extract_strided_slice %318 {offsets = [0, 64], sizes = [2, 32], strides = [1, 1]} : vector<2x96xf32> to vector<2x32xf32>
    %335 = vector.broadcast %33 : vector<1x32xf32> to vector<2x32xf32>
    %336 = arith.addf %334, %335 : vector<2x32xf32>
    %337 = arith.mulf %329, %336 : vector<2x32xf32>
    %338 = arith.addf %333, %337 : vector<2x32xf32>
    %339 = math.tanh %338 : vector<2x32xf32>
    %cst_64 = arith.constant 1.000000e+00 : f32
    %340 = vector.broadcast %cst_64 : f32 to vector<2x32xf32>
    %341 = arith.subf %340, %330 : vector<2x32xf32>
    %342 = arith.mulf %341, %339 : vector<2x32xf32>
    %343 = arith.mulf %330, %315 : vector<2x32xf32>
    %344 = arith.addf %342, %343 : vector<2x32xf32>
    %345 = vector.extract_strided_slice %19 {offsets = [2, 0], sizes = [2, 96], strides = [1, 1]} : vector<14x96xf32> to vector<2x96xf32>
    %cst_65 = arith.constant dense<0.000000e+00> : vector<2x96xf32>
    %346 = tpu.matmul %344, %316, %cst_65 {dimension_numbers = #tpu.dot_dimension_numbers<[1], [0], [0], [1], [0, 0, 1, 1], [], []>} : vector<2x32xf32>, vector<32x96xf32>, vector<2x96xf32> -> vector<2x96xf32>
    %347 = vector.extract_strided_slice %345 {offsets = [0, 0], sizes = [2, 64], strides = [1, 1]} : vector<2x96xf32> to vector<2x64xf32>
    %348 = vector.extract_strided_slice %346 {offsets = [0, 0], sizes = [2, 64], strides = [1, 1]} : vector<2x96xf32> to vector<2x64xf32>
    %349 = arith.addf %347, %348 : vector<2x64xf32>
    %350 = vector.broadcast %31 : vector<1x64xf32> to vector<2x64xf32>
    %351 = arith.addf %349, %350 : vector<2x64xf32>
    %352 = arith.negf %351 : vector<2x64xf32>
    %353 = math.exp %352 : vector<2x64xf32>
    %cst_66 = arith.constant 1.000000e+00 : f32
    %354 = vector.broadcast %cst_66 : f32 to vector<2x64xf32>
    %355 = arith.addf %354, %353 : vector<2x64xf32>
    %356 = arith.divf %354, %355 : vector<2x64xf32>
    %357 = vector.extract_strided_slice %356 {offsets = [0, 0], sizes = [2, 32], strides = [1, 1]} : vector<2x64xf32> to vector<2x32xf32>
    %358 = vector.extract_strided_slice %356 {offsets = [0, 32], sizes = [2, 32], strides = [1, 1]} : vector<2x64xf32> to vector<2x32xf32>
    %359 = vector.extract_strided_slice %345 {offsets = [0, 64], sizes = [2, 32], strides = [1, 1]} : vector<2x96xf32> to vector<2x32xf32>
    %360 = vector.broadcast %32 : vector<1x32xf32> to vector<2x32xf32>
    %361 = arith.addf %359, %360 : vector<2x32xf32>
    %362 = vector.extract_strided_slice %346 {offsets = [0, 64], sizes = [2, 32], strides = [1, 1]} : vector<2x96xf32> to vector<2x32xf32>
    %363 = vector.broadcast %33 : vector<1x32xf32> to vector<2x32xf32>
    %364 = arith.addf %362, %363 : vector<2x32xf32>
    %365 = arith.mulf %357, %364 : vector<2x32xf32>
    %366 = arith.addf %361, %365 : vector<2x32xf32>
    %367 = math.tanh %366 : vector<2x32xf32>
    %cst_67 = arith.constant 1.000000e+00 : f32
    %368 = vector.broadcast %cst_67 : f32 to vector<2x32xf32>
    %369 = arith.subf %368, %358 : vector<2x32xf32>
    %370 = arith.mulf %369, %367 : vector<2x32xf32>
    %371 = arith.mulf %358, %344 : vector<2x32xf32>
    %372 = arith.addf %370, %371 : vector<2x32xf32>
    %373 = vector.extract_strided_slice %19 {offsets = [4, 0], sizes = [2, 96], strides = [1, 1]} : vector<14x96xf32> to vector<2x96xf32>
    %cst_68 = arith.constant dense<0.000000e+00> : vector<2x96xf32>
    %374 = tpu.matmul %372, %316, %cst_68 {dimension_numbers = #tpu.dot_dimension_numbers<[1], [0], [0], [1], [0, 0, 1, 1], [], []>} : vector<2x32xf32>, vector<32x96xf32>, vector<2x96xf32> -> vector<2x96xf32>
    %375 = vector.extract_strided_slice %373 {offsets = [0, 0], sizes = [2, 64], strides = [1, 1]} : vector<2x96xf32> to vector<2x64xf32>
    %376 = vector.extract_strided_slice %374 {offsets = [0, 0], sizes = [2, 64], strides = [1, 1]} : vector<2x96xf32> to vector<2x64xf32>
    %377 = arith.addf %375, %376 : vector<2x64xf32>
    %378 = vector.broadcast %31 : vector<1x64xf32> to vector<2x64xf32>
    %379 = arith.addf %377, %378 : vector<2x64xf32>
    %380 = arith.negf %379 : vector<2x64xf32>
    %381 = math.exp %380 : vector<2x64xf32>
    %cst_69 = arith.constant 1.000000e+00 : f32
    %382 = vector.broadcast %cst_69 : f32 to vector<2x64xf32>
    %383 = arith.addf %382, %381 : vector<2x64xf32>
    %384 = arith.divf %382, %383 : vector<2x64xf32>
    %385 = vector.extract_strided_slice %384 {offsets = [0, 0], sizes = [2, 32], strides = [1, 1]} : vector<2x64xf32> to vector<2x32xf32>
    %386 = vector.extract_strided_slice %384 {offsets = [0, 32], sizes = [2, 32], strides = [1, 1]} : vector<2x64xf32> to vector<2x32xf32>
    %387 = vector.extract_strided_slice %373 {offsets = [0, 64], sizes = [2, 32], strides = [1, 1]} : vector<2x96xf32> to vector<2x32xf32>
    %388 = vector.broadcast %32 : vector<1x32xf32> to vector<2x32xf32>
    %389 = arith.addf %387, %388 : vector<2x32xf32>
    %390 = vector.extract_strided_slice %374 {offsets = [0, 64], sizes = [2, 32], strides = [1, 1]} : vector<2x96xf32> to vector<2x32xf32>
    %391 = vector.broadcast %33 : vector<1x32xf32> to vector<2x32xf32>
    %392 = arith.addf %390, %391 : vector<2x32xf32>
    %393 = arith.mulf %385, %392 : vector<2x32xf32>
    %394 = arith.addf %389, %393 : vector<2x32xf32>
    %395 = math.tanh %394 : vector<2x32xf32>
    %cst_70 = arith.constant 1.000000e+00 : f32
    %396 = vector.broadcast %cst_70 : f32 to vector<2x32xf32>
    %397 = arith.subf %396, %386 : vector<2x32xf32>
    %398 = arith.mulf %397, %395 : vector<2x32xf32>
    %399 = arith.mulf %386, %372 : vector<2x32xf32>
    %400 = arith.addf %398, %399 : vector<2x32xf32>
    %401 = vector.extract_strided_slice %19 {offsets = [6, 0], sizes = [2, 96], strides = [1, 1]} : vector<14x96xf32> to vector<2x96xf32>
    %cst_71 = arith.constant dense<0.000000e+00> : vector<2x96xf32>
    %402 = tpu.matmul %400, %316, %cst_71 {dimension_numbers = #tpu.dot_dimension_numbers<[1], [0], [0], [1], [0, 0, 1, 1], [], []>} : vector<2x32xf32>, vector<32x96xf32>, vector<2x96xf32> -> vector<2x96xf32>
    %403 = vector.extract_strided_slice %401 {offsets = [0, 0], sizes = [2, 64], strides = [1, 1]} : vector<2x96xf32> to vector<2x64xf32>
    %404 = vector.extract_strided_slice %402 {offsets = [0, 0], sizes = [2, 64], strides = [1, 1]} : vector<2x96xf32> to vector<2x64xf32>
    %405 = arith.addf %403, %404 : vector<2x64xf32>
    %406 = vector.broadcast %31 : vector<1x64xf32> to vector<2x64xf32>
    %407 = arith.addf %405, %406 : vector<2x64xf32>
    %408 = arith.negf %407 : vector<2x64xf32>
    %409 = math.exp %408 : vector<2x64xf32>
    %cst_72 = arith.constant 1.000000e+00 : f32
    %410 = vector.broadcast %cst_72 : f32 to vector<2x64xf32>
    %411 = arith.addf %410, %409 : vector<2x64xf32>
    %412 = arith.divf %410, %411 : vector<2x64xf32>
    %413 = vector.extract_strided_slice %412 {offsets = [0, 0], sizes = [2, 32], strides = [1, 1]} : vector<2x64xf32> to vector<2x32xf32>
    %414 = vector.extract_strided_slice %412 {offsets = [0, 32], sizes = [2, 32], strides = [1, 1]} : vector<2x64xf32> to vector<2x32xf32>
    %415 = vector.extract_strided_slice %401 {offsets = [0, 64], sizes = [2, 32], strides = [1, 1]} : vector<2x96xf32> to vector<2x32xf32>
    %416 = vector.broadcast %32 : vector<1x32xf32> to vector<2x32xf32>
    %417 = arith.addf %415, %416 : vector<2x32xf32>
    %418 = vector.extract_strided_slice %402 {offsets = [0, 64], sizes = [2, 32], strides = [1, 1]} : vector<2x96xf32> to vector<2x32xf32>
    %419 = vector.broadcast %33 : vector<1x32xf32> to vector<2x32xf32>
    %420 = arith.addf %418, %419 : vector<2x32xf32>
    %421 = arith.mulf %413, %420 : vector<2x32xf32>
    %422 = arith.addf %417, %421 : vector<2x32xf32>
    %423 = math.tanh %422 : vector<2x32xf32>
    %cst_73 = arith.constant 1.000000e+00 : f32
    %424 = vector.broadcast %cst_73 : f32 to vector<2x32xf32>
    %425 = arith.subf %424, %414 : vector<2x32xf32>
    %426 = arith.mulf %425, %423 : vector<2x32xf32>
    %427 = arith.mulf %414, %400 : vector<2x32xf32>
    %428 = arith.addf %426, %427 : vector<2x32xf32>
    %429 = vector.extract_strided_slice %19 {offsets = [8, 0], sizes = [2, 96], strides = [1, 1]} : vector<14x96xf32> to vector<2x96xf32>
    %cst_74 = arith.constant dense<0.000000e+00> : vector<2x96xf32>
    %430 = tpu.matmul %428, %316, %cst_74 {dimension_numbers = #tpu.dot_dimension_numbers<[1], [0], [0], [1], [0, 0, 1, 1], [], []>} : vector<2x32xf32>, vector<32x96xf32>, vector<2x96xf32> -> vector<2x96xf32>
    %431 = vector.extract_strided_slice %429 {offsets = [0, 0], sizes = [2, 64], strides = [1, 1]} : vector<2x96xf32> to vector<2x64xf32>
    %432 = vector.extract_strided_slice %430 {offsets = [0, 0], sizes = [2, 64], strides = [1, 1]} : vector<2x96xf32> to vector<2x64xf32>
    %433 = arith.addf %431, %432 : vector<2x64xf32>
    %434 = vector.broadcast %31 : vector<1x64xf32> to vector<2x64xf32>
    %435 = arith.addf %433, %434 : vector<2x64xf32>
    %436 = arith.negf %435 : vector<2x64xf32>
    %437 = math.exp %436 : vector<2x64xf32>
    %cst_75 = arith.constant 1.000000e+00 : f32
    %438 = vector.broadcast %cst_75 : f32 to vector<2x64xf32>
    %439 = arith.addf %438, %437 : vector<2x64xf32>
    %440 = arith.divf %438, %439 : vector<2x64xf32>
    %441 = vector.extract_strided_slice %440 {offsets = [0, 0], sizes = [2, 32], strides = [1, 1]} : vector<2x64xf32> to vector<2x32xf32>
    %442 = vector.extract_strided_slice %440 {offsets = [0, 32], sizes = [2, 32], strides = [1, 1]} : vector<2x64xf32> to vector<2x32xf32>
    %443 = vector.extract_strided_slice %429 {offsets = [0, 64], sizes = [2, 32], strides = [1, 1]} : vector<2x96xf32> to vector<2x32xf32>
    %444 = vector.broadcast %32 : vector<1x32xf32> to vector<2x32xf32>
    %445 = arith.addf %443, %444 : vector<2x32xf32>
    %446 = vector.extract_strided_slice %430 {offsets = [0, 64], sizes = [2, 32], strides = [1, 1]} : vector<2x96xf32> to vector<2x32xf32>
    %447 = vector.broadcast %33 : vector<1x32xf32> to vector<2x32xf32>
    %448 = arith.addf %446, %447 : vector<2x32xf32>
    %449 = arith.mulf %441, %448 : vector<2x32xf32>
    %450 = arith.addf %445, %449 : vector<2x32xf32>
    %451 = math.tanh %450 : vector<2x32xf32>
    %cst_76 = arith.constant 1.000000e+00 : f32
    %452 = vector.broadcast %cst_76 : f32 to vector<2x32xf32>
    %453 = arith.subf %452, %442 : vector<2x32xf32>
    %454 = arith.mulf %453, %451 : vector<2x32xf32>
    %455 = arith.mulf %442, %428 : vector<2x32xf32>
    %456 = arith.addf %454, %455 : vector<2x32xf32>
    %457 = vector.extract_strided_slice %19 {offsets = [10, 0], sizes = [2, 96], strides = [1, 1]} : vector<14x96xf32> to vector<2x96xf32>
    %cst_77 = arith.constant dense<0.000000e+00> : vector<2x96xf32>
    %458 = tpu.matmul %456, %316, %cst_77 {dimension_numbers = #tpu.dot_dimension_numbers<[1], [0], [0], [1], [0, 0, 1, 1], [], []>} : vector<2x32xf32>, vector<32x96xf32>, vector<2x96xf32> -> vector<2x96xf32>
    %459 = vector.extract_strided_slice %457 {offsets = [0, 0], sizes = [2, 64], strides = [1, 1]} : vector<2x96xf32> to vector<2x64xf32>
    %460 = vector.extract_strided_slice %458 {offsets = [0, 0], sizes = [2, 64], strides = [1, 1]} : vector<2x96xf32> to vector<2x64xf32>
    %461 = arith.addf %459, %460 : vector<2x64xf32>
    %462 = vector.broadcast %31 : vector<1x64xf32> to vector<2x64xf32>
    %463 = arith.addf %461, %462 : vector<2x64xf32>
    %464 = arith.negf %463 : vector<2x64xf32>
    %465 = math.exp %464 : vector<2x64xf32>
    %cst_78 = arith.constant 1.000000e+00 : f32
    %466 = vector.broadcast %cst_78 : f32 to vector<2x64xf32>
    %467 = arith.addf %466, %465 : vector<2x64xf32>
    %468 = arith.divf %466, %467 : vector<2x64xf32>
    %469 = vector.extract_strided_slice %468 {offsets = [0, 0], sizes = [2, 32], strides = [1, 1]} : vector<2x64xf32> to vector<2x32xf32>
    %470 = vector.extract_strided_slice %468 {offsets = [0, 32], sizes = [2, 32], strides = [1, 1]} : vector<2x64xf32> to vector<2x32xf32>
    %471 = vector.extract_strided_slice %457 {offsets = [0, 64], sizes = [2, 32], strides = [1, 1]} : vector<2x96xf32> to vector<2x32xf32>
    %472 = vector.broadcast %32 : vector<1x32xf32> to vector<2x32xf32>
    %473 = arith.addf %471, %472 : vector<2x32xf32>
    %474 = vector.extract_strided_slice %458 {offsets = [0, 64], sizes = [2, 32], strides = [1, 1]} : vector<2x96xf32> to vector<2x32xf32>
    %475 = vector.broadcast %33 : vector<1x32xf32> to vector<2x32xf32>
    %476 = arith.addf %474, %475 : vector<2x32xf32>
    %477 = arith.mulf %469, %476 : vector<2x32xf32>
    %478 = arith.addf %473, %477 : vector<2x32xf32>
    %479 = math.tanh %478 : vector<2x32xf32>
    %cst_79 = arith.constant 1.000000e+00 : f32
    %480 = vector.broadcast %cst_79 : f32 to vector<2x32xf32>
    %481 = arith.subf %480, %470 : vector<2x32xf32>
    %482 = arith.mulf %481, %479 : vector<2x32xf32>
    %483 = arith.mulf %470, %456 : vector<2x32xf32>
    %484 = arith.addf %482, %483 : vector<2x32xf32>
    %485 = vector.extract_strided_slice %19 {offsets = [12, 0], sizes = [2, 96], strides = [1, 1]} : vector<14x96xf32> to vector<2x96xf32>
    %cst_80 = arith.constant dense<0.000000e+00> : vector<2x96xf32>
    %486 = tpu.matmul %484, %316, %cst_80 {dimension_numbers = #tpu.dot_dimension_numbers<[1], [0], [0], [1], [0, 0, 1, 1], [], []>} : vector<2x32xf32>, vector<32x96xf32>, vector<2x96xf32> -> vector<2x96xf32>
    %487 = vector.extract_strided_slice %485 {offsets = [0, 0], sizes = [2, 64], strides = [1, 1]} : vector<2x96xf32> to vector<2x64xf32>
    %488 = vector.extract_strided_slice %486 {offsets = [0, 0], sizes = [2, 64], strides = [1, 1]} : vector<2x96xf32> to vector<2x64xf32>
    %489 = arith.addf %487, %488 : vector<2x64xf32>
    %490 = vector.broadcast %31 : vector<1x64xf32> to vector<2x64xf32>
    %491 = arith.addf %489, %490 : vector<2x64xf32>
    %492 = arith.negf %491 : vector<2x64xf32>
    %493 = math.exp %492 : vector<2x64xf32>
    %cst_81 = arith.constant 1.000000e+00 : f32
    %494 = vector.broadcast %cst_81 : f32 to vector<2x64xf32>
    %495 = arith.addf %494, %493 : vector<2x64xf32>
    %496 = arith.divf %494, %495 : vector<2x64xf32>
    %497 = vector.extract_strided_slice %496 {offsets = [0, 0], sizes = [2, 32], strides = [1, 1]} : vector<2x64xf32> to vector<2x32xf32>
    %498 = vector.extract_strided_slice %496 {offsets = [0, 32], sizes = [2, 32], strides = [1, 1]} : vector<2x64xf32> to vector<2x32xf32>
    %499 = vector.extract_strided_slice %485 {offsets = [0, 64], sizes = [2, 32], strides = [1, 1]} : vector<2x96xf32> to vector<2x32xf32>
    %500 = vector.broadcast %32 : vector<1x32xf32> to vector<2x32xf32>
    %501 = arith.addf %499, %500 : vector<2x32xf32>
    %502 = vector.extract_strided_slice %486 {offsets = [0, 64], sizes = [2, 32], strides = [1, 1]} : vector<2x96xf32> to vector<2x32xf32>
    %503 = vector.broadcast %33 : vector<1x32xf32> to vector<2x32xf32>
    %504 = arith.addf %502, %503 : vector<2x32xf32>
    %505 = arith.mulf %497, %504 : vector<2x32xf32>
    %506 = arith.addf %501, %505 : vector<2x32xf32>
    %507 = math.tanh %506 : vector<2x32xf32>
    %cst_82 = arith.constant 1.000000e+00 : f32
    %508 = vector.broadcast %cst_82 : f32 to vector<2x32xf32>
    %509 = arith.subf %508, %498 : vector<2x32xf32>
    %510 = arith.mulf %509, %507 : vector<2x32xf32>
    %511 = arith.mulf %498, %484 : vector<2x32xf32>
    %512 = arith.addf %510, %511 : vector<2x32xf32>
    %513 = tpu.concatenate %344, %372, %400, %428, %456, %484, %512 in 0 : vector<2x32xf32>, vector<2x32xf32>, vector<2x32xf32>, vector<2x32xf32>, vector<2x32xf32>, vector<2x32xf32>, vector<2x32xf32> -> vector<14x32xf32>
    %c0_83 = arith.constant 0 : index
    %c0_84 = arith.constant 0 : index
    %514 = vector.load %arg15[%c0_83, %c0_84] : memref<32x16xf32, #tpu.memory_space<vmem>>, vector<32x16xf32>
    %cst_85 = arith.constant dense<0.000000e+00> : vector<14x16xf32>
    %515 = tpu.matmul %513, %514, %cst_85 {dimension_numbers = #tpu.dot_dimension_numbers<[1], [0], [0], [1], [0, 0, 1, 1], [], []>} : vector<14x32xf32>, vector<32x16xf32>, vector<14x16xf32> -> vector<14x16xf32>
    %c0_86 = arith.constant 0 : index
    %c0_87 = arith.constant 0 : index
    %516 = vector.load %arg16[%c0_86, %c0_87] : memref<1x16xf32, #tpu.memory_space<vmem>>, vector<1x16xf32>
    %517 = vector.broadcast %516 : vector<1x16xf32> to vector<14x16xf32>
    %518 = arith.addf %515, %517 : vector<14x16xf32>
    %cst_88 = arith.constant dense<0xFF800000> : vector<14xf32>
    %519 = vector.multi_reduction <maximumf>, %518, %cst_88 [1] : vector<14x16xf32> to vector<14xf32>
    %520 = vector.shape_cast %519 : vector<14xf32> to vector<14x1xf32>
    %521 = vector.broadcast %520 : vector<14x1xf32> to vector<14x16xf32>
    %522 = arith.subf %518, %521 : vector<14x16xf32>
    %523 = math.exp %522 : vector<14x16xf32>
    %cst_89 = arith.constant dense<0.000000e+00> : vector<14xf32>
    %524 = vector.multi_reduction <add>, %523, %cst_89 [1] : vector<14x16xf32> to vector<14xf32>
    %525 = vector.shape_cast %524 : vector<14xf32> to vector<14x1xf32>
    %526 = tpu.reciprocal %525 : vector<14x1xf32> -> vector<14x1xf32>
    %527 = vector.broadcast %526 : vector<14x1xf32> to vector<14x16xf32>
    %528 = arith.mulf %523, %527 : vector<14x16xf32>
    %cst_90 = arith.constant 9.99999971E-10 : f32
    %529 = vector.broadcast %cst_90 : f32 to vector<14x16xf32>
    %530 = arith.addf %528, %529 : vector<14x16xf32>
    %531 = math.log %530 : vector<14x16xf32>
    %532 = tpu.iota {dimensions = array<i32: 1>} : vector<2x16xi32>
    %c1_i32_91 = arith.constant 1 : i32
    %533 = vector.broadcast %c1_i32_91 : i32 to vector<2x16xi32>
    %534 = arith.cmpi eq, %532, %533 : vector<2x16xi32>
    %535 = arith.extui %534 : vector<2x16xi1> to vector<2x16xi32>
    %536 = arith.sitofp %535 : vector<2x16xi32> to vector<2x16xf32>
    %cst_92 = arith.constant 9.99999971E-10 : f32
    %537 = vector.broadcast %cst_92 : f32 to vector<2x16xf32>
    %538 = arith.addf %536, %537 : vector<2x16xf32>
    %539 = math.log %538 : vector<2x16xf32>
    %540 = tpu.concatenate %539, %531 in 0 : vector<2x16xf32>, vector<14x16xf32> -> vector<16x16xf32>
    %c0_93 = arith.constant 0 : index
    %c0_94 = arith.constant 0 : index
    %541 = vector.load %arg17[%c0_93, %c0_94] : memref<16x16xf32, #tpu.memory_space<vmem>>, vector<16x16xf32>
    tpu.vector_store %arg17[%c0_93, %c0_94], %540 {strides = array<i32>} : memref<16x16xf32, #tpu.memory_space<vmem>>, vector<16x16xf32>,
    return
  }
}

</mosaic_0001>

<bundles_post_ra>
// kernel: basic_model_forward.1
= control target key start
LH: loop header
LB: loop body
LE: loop exit
PB: predicated region body
PF: predicated region fallthrough
CT: control target
= control target key end

     0   :  { %s3837_s0 = inlined_call_operand.vmem [shape: s32[2,8], index: 0, kind: input, shape index: {}]   ;;  %s3838_s1 = inlined_call_operand.vmem [shape: s32[16,1], index: 1, kind: input, shape index: {}]   ;;  %s3839_s2 = inlined_call_operand.vmem [shape: s32[14,1], index: 2, kind: input, shape index: {}]   ;;  %s3840_s3 = inlined_call_operand.hbm [shape: f32[16,32], index: 3, kind: input, shape index: {}]   ;;  %s3841_s4 = inlined_call_operand.hbm [shape: f32[16,32], index: 4, kind: input, shape index: {}]   ;;  %s3842_s5 = inlined_call_operand.vmem [shape: f32[32,96], index: 5, kind: input, shape index: {}]   ;;  %s3843_s6 = inlined_call_operand.vmem [shape: f32[32,96], index: 6, kind: input, shape index: {}]   ;;  %s3844_s7 = inlined_call_operand.vmem [shape: f32[1,96], index: 7, kind: input, shape index: {}]   ;;  %s3845_s8 = inlined_call_operand.hbm [shape: f32[1,96], index: 8, kind: input, shape index: {}]   ;;  %s3846_s9 = inlined_call_operand.vmem [shape: f32[32,32], index: 9, kind: input, shape index: {}]   ;;  %s3847_s10 = inlined_call_operand.hbm [shape: f32[1,32], index: 10, kind: input, shape index: {}]   ;;  %s3848_s11 = inlined_call_operand.vmem [shape: f32[32,96], index: 11, kind: input, shape index: {}]   ;;  %s3849_s12 = inlined_call_operand.hbm [shape: f32[32,96], index: 12, kind: input, shape index: {}]   ;;  %s3850_s13 = inlined_call_operand.hbm [shape: f32[1,96], index: 13, kind: input, shape index: {}]   ;;  %s3851_s14 = inlined_call_operand.hbm [shape: f32[1,96], index: 14, kind: input, shape index: {}]   ;;  %s3852_s15 = inlined_call_operand.vmem [shape: f32[32,16], index: 15, kind: input, shape index: {}]   ;;  %s3853_s16 = inlined_call_operand.hbm [shape: f32[1,16], index: 16, kind: input, shape index: {}]   ;;  %s3854_s17 = inlined_call_operand.vmem [shape: f32[16,16], index: 17, kind: output, shape index: {}]  }
   0x1   :  { %3856 = sst [smem:[#allocation20_spill]] %s3837_s0 }
   0x2   :  { %3857 = sst [smem:[#allocation21_spill]] %s3838_s1 }
   0x3   :  { %22 = vsyncpa [#allocation3], 0 }
   0x4   :  { %23 = vsyncpa [#allocation5], 0 }
   0x5   :  { %24 = vsyncpa [#allocation8], 0 }
   0x6   :  { %25 = vsyncpa [#allocation11], 0 }
   0x7   :  { %26 = vsyncpa [#allocation14], 0  ;;  %s3175_s24 = smov [#allocation4]   ;;  %s3176_s26 = smov [#allocation7]  }
   0x8   :  { %s50_s25 = sshll.u32 %s3175_s24, 4  ;;  %s81_s27 = sshll.u32 %s3176_s26, 4  ;;  %s51_s25 = int_to_ptr.vmem [resolvable:$true] %s50_s25  ;;  %s82_s27 = int_to_ptr.vmem [resolvable:$true] %s81_s27 }
   0x9   :  { %s3013_s28 = scalar_lea.vmem %s51_s25, 256  ;;  %p3018_p1 = scmp.lt.s32.totalorder %s51_s25, %s51_s25 }
   0xa   :  { %p3014_p0 = scmp.ne.s32.totalorder %s51_s25, %s3013_s28  ;;  %p3019_p2 = scmp.lt.s32.totalorder %s3013_s28, %s3013_s28 }
   0xc   :  { %p3020_p3 = por %p3019_p2, %p3018_p1 }
   0xe   :  { %p3021_p4 = pnand %p3020_p3, %p3014_p0 }
  0x10   :  { %3024 = shalt.err (!%p3021_p4)
}
  0x11   :  { %s3177_s29 = smov 128   ;;  %s3178_s0 = smov 8  }
  0x12   :  { %56 = dma.hbm_to_vmem [thread:$0]  %s3841_s4, 256, %s51_s25, [#allocation5], %s3177_s29, %s3177_s29, %s3178_s0  }
  0x13   :  { %s3033_s19 = scalar_lea.vmem %s82_s27, 16  ;;  %s3037_s1 = scalar_lea.vmem %s82_s27, 32 }
  0x14   :  { %p3034_p5 = scmp.ne.s32.totalorder %s82_s27, %s3033_s19  ;;  %p3038_p6 = scmp.lt.s32.totalorder %s82_s27, %s82_s27 }
  0x15   :  { %p3039_p7 = scmp.lt.s32.totalorder %s3037_s1, %s3033_s19 }
  0x17   :  { %p3040_p8 = por %p3039_p7, %p3038_p6 }
  0x19   :  { %p3041_p9 = pnand %p3040_p8, %p3034_p5 }
  0x1b   :  { %3044 = shalt.err (!%p3041_p9)
}
  0x1c   :  { %84 = dma.hbm_to_vmem [thread:$0]  %s3847_s10, 16, %s82_s27, [#allocation8]  }
  0x1d   :  { %s3179_s22 = smov [#allocation10]   ;;  %s3180_s24 = smov [#allocation2]  }
  0x1e   :  { %s105_s23 = sshll.u32 %s3179_s22, 4  ;;  %s38_s26 = sshll.u32 %s3180_s24, 4  ;;  %s106_s23 = int_to_ptr.vmem [resolvable:$true] %s105_s23  ;;  %s39_s26 = int_to_ptr.vmem [resolvable:$true] %s38_s26 }
  0x1f   :  { %s3053_s28 = scalar_lea.vmem %s106_s23, 16  ;;  %s3057_s4 = scalar_lea.vmem %s106_s23, 32 }
  0x20   :  { %p3054_p10 = scmp.ne.s32.totalorder %s106_s23, %s3053_s28  ;;  %p3058_p11 = scmp.lt.s32.totalorder %s106_s23, %s106_s23 }
  0x21   :  { %p3059_p12 = scmp.lt.s32.totalorder %s3057_s4, %s3053_s28 }
  0x23   :  { %p3060_p13 = por %p3059_p12, %p3058_p11 }
  0x25   :  { %p3061_p0 = pnand %p3060_p13, %p3054_p10 }
  0x27   :  { %3064 = shalt.err (!%p3061_p0)
}
  0x28   :  { %108 = dma.hbm_to_vmem [thread:$0]  %s3850_s13, 16, %s106_s23, [#allocation11]  }
  0x29   :  { %s3073_s18 = scalar_lea.vmem %s39_s26, 256  ;;  %p3078_p2 = scmp.lt.s32.totalorder %s39_s26, %s39_s26 }
  0x2a   :  { %p3074_p1 = scmp.ne.s32.totalorder %s39_s26, %s3073_s18  ;;  %p3079_p3 = scmp.lt.s32.totalorder %s3073_s18, %s3073_s18 }
  0x2c   :  { %p3080_p4 = por %p3079_p3, %p3078_p2 }
  0x2e   :  { %p3081_p5 = pnand %p3080_p4, %p3074_p1 }
  0x30   :  { %3084 = shalt.err (!%p3081_p5)
}
  0x31   :  { %44 = dma.hbm_to_vmem [thread:$0]  %s3840_s3, 256, %s39_s26, [#allocation3], %s3177_s29, %s3177_s29, %s3178_s0  }
  0x32   :  { %s3181_s19 = smov [#allocation6]   ;;  %s3182_s20 = smov [#allocation9]  }
  0x33   :  { %s69_s1 = sshll.u32 %s3181_s19, 4  ;;  %s92_s21 = sshll.u32 %s3182_s20, 4  ;;  %s70_s1 = int_to_ptr.vmem [resolvable:$true] %s69_s1  ;;  %s93_s21 = int_to_ptr.vmem [resolvable:$true] %s92_s21 }
  0x34   :  { %s3093_s13 = scalar_lea.vmem %s70_s1, 16  ;;  %s3097_s22 = scalar_lea.vmem %s70_s1, 32 }
  0x35   :  { %p3094_p6 = scmp.ne.s32.totalorder %s70_s1, %s3093_s13  ;;  %p3098_p7 = scmp.lt.s32.totalorder %s70_s1, %s70_s1 }
  0x36   :  { %p3099_p8 = scmp.lt.s32.totalorder %s3097_s22, %s3093_s13 }
  0x38   :  { %p3100_p9 = por %p3099_p8, %p3098_p7 }
  0x3a   :  { %p3101_p10 = pnand %p3100_p9, %p3094_p6 }
  0x3c   :  { %3104 = shalt.err (!%p3101_p10)
}
  0x3d   :  { %72 = dma.hbm_to_vmem [thread:$0]  %s3845_s8, 16, %s70_s1, [#allocation5]  }
  0x3e   :  { %s3113_s28 = scalar_lea.vmem %s93_s21, 512  ;;  %p3118_p12 = scmp.lt.s32.totalorder %s93_s21, %s93_s21 }
  0x3f   :  { %p3114_p11 = scmp.ne.s32.totalorder %s93_s21, %s3113_s28  ;;  %p3119_p13 = scmp.lt.s32.totalorder %s3113_s28, %s3113_s28 }
  0x41   :  { %p3120_p0 = por %p3119_p13, %p3118_p12 }
  0x43   :  { %p3121_p1 = pnand %p3120_p0, %p3114_p11 }
  0x45   :  { %3124 = shalt.err (!%p3121_p1)
}
  0x46   :  { %98 = dma.hbm_to_vmem [thread:$0]  %s3849_s12, 512, %s93_s21, [#allocation8], %s3177_s29, %s3177_s29, %s3178_s0  }
  0x47   :  { %s3183_s4 = smov [#allocation12]   ;;  %s3184_s30 = smov [#allocation13]  }
  0x48   :  { %s115_s25 = sshll.u32 %s3183_s4, 4  ;;  %s127_s18 = sshll.u32 %s3184_s30, 4  ;;  %s116_s25 = int_to_ptr.vmem [resolvable:$true] %s115_s25  ;;  %s128_s18 = int_to_ptr.vmem [resolvable:$true] %s127_s18 }
  0x49   :  { %s3133_s8 = scalar_lea.vmem %s116_s25, 16  ;;  %s3137_s10 = scalar_lea.vmem %s116_s25, 32 }
  0x4a   :  { %p3134_p2 = scmp.ne.s32.totalorder %s116_s25, %s3133_s8  ;;  %p3138_p3 = scmp.lt.s32.totalorder %s116_s25, %s116_s25 }
  0x4b   :  { %p3139_p4 = scmp.lt.s32.totalorder %s3137_s10, %s3133_s8 }
  0x4d   :  { %p3140_p5 = por %p3139_p4, %p3138_p3 }
  0x4f   :  { %p3141_p6 = pnand %p3140_p5, %p3134_p2 }
  0x51   :  { %3144 = shalt.err (!%p3141_p6)
}
  0x52   :  { %118 = dma.hbm_to_vmem [thread:$0]  %s3851_s14, 16, %s116_s25, [#allocation11]  }
  0x53   :  { %s3153_s1 = scalar_lea.vmem %s128_s18, 16  ;;  %s3157_s12 = scalar_lea.vmem %s128_s18, 32 }
  0x54   :  { %p3154_p7 = scmp.ne.s32.totalorder %s128_s18, %s3153_s1  ;;  %p3158_p8 = scmp.lt.s32.totalorder %s128_s18, %s128_s18 }
  0x55   :  { %p3159_p9 = scmp.lt.s32.totalorder %s3157_s12, %s3153_s1 }
  0x57   :  { %p3160_p10 = por %p3159_p9, %p3158_p8 }
  0x59   :  { %p3161_p11 = pnand %p3160_p10, %p3154_p7 }
  0x5b   :  { %3164 = shalt.err (!%p3161_p11)
}
  0x5c   :  { %130 = dma.hbm_to_vmem [thread:$0]  %s3853_s16, 16, %s128_s18, [#allocation14]  }
  0x5d   :  { %3165 = dma.done.wait [#allocation3], 256  }
  0x5e   :  { %3166 = vsyncadd [#allocation3], 4294967040 }
  0x5f   :  { %3167 = dma.done.wait [#allocation5], 272  }
  0x60   :  { %3168 = vsyncadd [#allocation5], 4294967024 }
  0x61   :  { %3169 = dma.done.wait [#allocation8], 528  }
  0x62   :  { %3170 = vsyncadd [#allocation8], 4294966768 }
  0x63   :  { %3171 = dma.done.wait [#allocation11], 32  }
  0x64   :  { %3172 = vsyncadd [#allocation11], 4294967264 }
  0x65   :  { %3173 = dma.done.wait [#allocation14], 16  }
  0x66   :  { %3174 = vsyncadd [#allocation14], 4294967280  ;;  %v3185_v0 = vmov 0   ;;  %s3858_s21 = sld [smem:[#allocation21_spill]]  ;;  %v172_v2 = vld [vmem:[#allocation2 + $0x8] sm:$0xff]  ;;  %v171_v3 = vld [vmem:[#allocation2] sm:$0xff]  ;;  %v155_v8 = vlaneseq }
  0x67   :  { %2899 = vset.pattern.permute.xlu0 %v3185_v0  ;;  %2900 = vset.pattern.permute.xlu1 %v3185_v0  ;;  %v258_v5 = vld [vmem:[%s3842_s5 + $0x18] sm:$0xff]  ;;  %v257_v6 = vld [vmem:[%s3842_s5 + $0x10] sm:$0xff]  ;;  %v256_v7 = vld [vmem:[%s3842_s5 + $0x8] sm:$0xff]  ;;  %vm173_vm0 = vcmask 130048   ;;  %v3186_v11 = vmov 0.0   ;;  %vm259_vm3 = vcmask 261120  }
  0x68   :  { %2658 = vmatprep.subr.mxu0 %v172_v2  ;;  %2665 = vmatprep.subr.mxu1 %v258_v5  ;;  %v3329_v9 = vand.u32 127, %v155_v8  ;;  %v255_v15 = vld [vmem:[%s3842_s5] sm:$0xff]  ;;  %v3344_v18 = vld [vmem:[%s3843_s6 + $0x18] sm:$0xff]  ;;  %v3351_v19 = vld [vmem:[%s3843_s6 + $0x10] sm:$0xff]  ;;  %vm3187_vm4 = vmmov 0   ;;  %v619_v24 = vshrl.u32 %v155_v8, 7 }
  0x69   :  { %2659 = vmatpush3.msra.mxu0 %v172_v2  ;;  %2666 = vmatpush3.msra.mxu1 %v258_v5  ;;  %v3360_v20 = vld [vmem:[%s3843_s6 + $0x8] sm:$0xff]  ;;  %v3367_v21 = vld [vmem:[%s3843_s6] sm:$0xff]  ;;  %v356_v25 = vld [vmem:[#allocation4 + $0x8] sm:$0xff]  ;;  %s3189_s3 = smov 96   ;;  %s3859_s4 = sld [smem:[#allocation20_spill]]  ;;  %vm533_vm8 = vcmask 58368  }
  0x6a   :  { %2660 = vmatprep.subr.mxu0 %v171_v3  ;;  %2667 = vmatprep.subr.mxu1 %v257_v6  ;;  %v341_v22 = vld [vmem:[%s3839_s2] sm:$0xff]  ;;  %v342_v23 = vld [vmem:[%s3839_s2 + $0x8] sm:$0x3f]  ;;  %v355_v26 = vld [vmem:[#allocation4] sm:$0xff]  ;;  %v3392_v29 = vsub.s32 0, %v619_v24  ;;  %s3188_s2 = smov 64  }
  0x6b   :  { %2661 = vmatpush3.msra.mxu0 %v171_v3  ;;  %2668 = vmatpush3.msra.mxu1 %v257_v6  ;;  %v524_v28 = vld [vmem:[#allocation6] sm:$0x1]  ;;  %v441_v54 = vld [vmem:[%s3848_s11 + $0x18] sm:$0xff]  ;;  %v440_v55 = vld [vmem:[%s3848_s11 + $0x10] sm:$0xff]  ;;  %s3190_s18 = smov 32  }
  0x6c   :  { %v157_v1 = vld [vmem:[%s3858_s21] sm:$0xff]  ;;  %v158_v4 = vld [vmem:[%s3858_s21 + $0x8] sm:$0xff]  ;;  %2669 = vmatprep.subr.mxu1 %v256_v7  ;;  %344 = vperm.xlu1 %2900, %v341_v22   ;;  %v3395_v30 = vrot.slane %v524_v28, %v3392_v29 }
  0x6d   :  { %160 = vperm.xlu0 %2899, %v157_v1   ;;  %2670 = vmatpush3.msra.mxu1 %v256_v7  ;;  %v523_v39 = vld [vmem:[%s3844_s7] sm:$0x1]  ;;  %v439_v57 = vld [vmem:[%s3848_s11 + $0x8] sm:$0xff] }
  0x6e   :  { %2671 = vmatprep.subr.mxu1 %v255_v15  ;;  %2676 = vmatprep.subr.mxu0 %v356_v25  ;;  %v527_v40 = vadd.f32 %v524_v28, %v523_v39  ;;  %v3417_v50 = vrot.slane %v523_v39, %v3392_v29  ;;  %v438_v59 = vld [vmem:[%s3848_s11] sm:$0xff] }
  0x6f   :  { %2672 = vmatpush3.msra.mxu1 %v255_v15 }
  0x70   :  { %2694 = vmatprep.subr.mxu1 %v3186_v11  ;;  %347 = vperm.xlu1 %2900, %v342_v23   ;;  %v3412_v42 = vrot.slane %v527_v40, %v3392_v29 }
  0x71   :  { %163 = vperm.xlu0 %2899, %v158_v4  }
  0xe7   :  { %v345_v35 = vpop.permute.xlu1 %344 }
  0xe8   :  { %v161_v10 = vpop.permute.xlu0 %160  ;;  %vm349_vm5 = vcmp.eq.s32.totalorder %v3329_v9, %v345_v35 }
  0xe9   :  { %vm165_vm1 = vcmp.eq.s32.totalorder %v3329_v9, %v161_v10  ;;  %v2510_v36 = vsel %vm349_vm5, 1.0, %v3186_v11  ;;  %vm2348_vm5 = vcmask 1043456  }
  0xea   :  { %v2504_v12 = vsel %vm165_vm1, 1.0, %v3186_v11 }
  0xeb   :  { %2662 = vmatprep.mubr.msk.f32.mxu0 %vm173_vm0, %v2504_v12  ;;  %v348_v37 = vpop.permute.xlu1 %347 }
  0xec   :  { %v164_v13 = vpop.permute.xlu0 %163  ;;  %vm350_vm6 = vcmp.eq.s32.totalorder %v3329_v9, %v348_v37 }
  0xed   :  { %vm166_vm2 = vcmp.eq.s32.totalorder %v3329_v9, %v164_v13  ;;  %v2511_v38 = vsel %vm350_vm6, 1.0, %v3186_v11  ;;  %vm2350_vm6 = vcmask 1045504  }
  0xee   :  { %v2505_v14 = vsel %vm166_vm2, 1.0, %v3186_v11  ;;  %vm2346_vm2 = vcmask 1041408  }
  0xef   :  { %2663 = vmatmul.mubr.msk.f32.vlgmr.msra.gmra.mxu0 %vm173_vm0, %v2505_v14 }
  0xf0   :  { %2677 = vmatpush3.msra.mxu0 %v356_v25  ;;  %2680 = vmatprep.mubr.msk.f32.mxu0 %vm173_vm0, %v2510_v36 }
  0xf1   :  { %2678 = vmatprep.subr.mxu0 %v355_v26 }
  0xf2   :  { %2679 = vmatpush3.msra.mxu0 %v355_v26 }
  0xf3   :  { %2681 = vmatmul.mubr.msk.f32.vlgmr.msra.gmra.mxu0 %vm173_vm0, %v2511_v38  ;;  %2683 = vmatprep.subr.mxu0 %v441_v54 }
  0xf4   :  { %2684 = vmatpush3.msra.mxu0 %v441_v54 }
  0xf5   :  { %2685 = vmatprep.subr.mxu0 %v440_v55 }
  0xf6   :  { %2686 = vmatpush3.msra.mxu0 %v440_v55 }
  0xf7   :  { %2687 = vmatprep.subr.mxu0 %v439_v57 }
  0xf8   :  { %2688 = vmatpush3.msra.mxu0 %v439_v57 }
  0xf9   :  { %2689 = vmatprep.subr.mxu0 %v438_v59 }
  0xfa   :  { %2690 = vmatpush3.msra.mxu0 %v438_v59 }
  0xfb   :  { %2705 = vmatprep.subr.mxu0 %v3186_v11 }
 0x1af   :  { %v2664_v16 = vpop.f32.mrf.mxu0 }
 0x1b1   :  { %v246_v17 = vpop.f32.mrf.mxu0 }
 0x1b2   :  { %2673 = vmatprep.mubr.msk.f32.mxu1 %vm259_vm3, %v246_v17 }
 0x1b3   :  { %2674 = vmatmul.mubr.msk.f32.vlgmr.msra.gmra.mxu1 %vm259_vm3, %v2664_v16  ;;  %v2682_v56 = vpop.f32.mrf.mxu0 }
 0x1b4   :  { %2695 = vmatpush3.msra.mxu1 %v3344_v18  ;;  %2702 = vmatprep.mubr.msk.f32.mxu1 %vm3187_vm4, %v3186_v11 }
 0x1b5   :  { %2696 = vmatprep.subr.mxu1 %v3186_v11  ;;  %v429_v58 = vpop.f32.mrf.mxu0 }
 0x1b6   :  { %2697 = vmatpush3.msra.mxu1 %v3351_v19  ;;  %2691 = vmatprep.mubr.msk.f32.mxu0 %vm259_vm3, %v429_v58 }
 0x1b7   :  { %2698 = vmatprep.subr.mxu1 %v3186_v11  ;;  %2692 = vmatmul.mubr.msk.f32.vlgmr.msra.gmra.mxu0 %vm259_vm3, %v2682_v56 }
 0x1b8   :  { %2699 = vmatpush3.msra.mxu1 %v3360_v20  ;;  %2713 = vmatprep.mubr.msk.f32.mxu0 %vm3187_vm4, %v3186_v11 }
 0x1b9   :  { %2700 = vmatprep.subr.mxu1 %v3186_v11  ;;  %2706 = vmatpush3.msra.mxu0 %v3344_v18 }
 0x1ba   :  { %2701 = vmatpush3.msra.mxu1 %v3367_v21  ;;  %2707 = vmatprep.subr.mxu0 %v3186_v11 }
 0x1bb   :  { %2703 = vmatmul.mubr.f32.vlgmr.msra.gmra.mxu1 %v3186_v11  ;;  %2716 = vmatprep.subr.mxu1 %v3186_v11 }
 0x1bc   :  { %2717 = vmatpush3.msra.mxu1 %v3344_v18  ;;  %2724 = vmatprep.mubr.msk.f32.mxu1 %vm3187_vm4, %v3186_v11 }
 0x1bd   :  { %2718 = vmatprep.subr.mxu1 %v3186_v11  ;;  %2708 = vmatpush3.msra.mxu0 %v3351_v19 }
 0x1be   :  { %2719 = vmatpush3.msra.mxu1 %v3351_v19  ;;  %2709 = vmatprep.subr.mxu0 %v3186_v11 }
 0x1bf   :  { %2720 = vmatprep.subr.mxu1 %v3186_v11  ;;  %2710 = vmatpush3.msra.mxu0 %v3360_v20 }
 0x1c0   :  { %2721 = vmatpush3.msra.mxu1 %v3360_v20  ;;  %2711 = vmatprep.subr.mxu0 %v3186_v11 }
 0x1c1   :  { %2722 = vmatprep.subr.mxu1 %v3186_v11  ;;  %2712 = vmatpush3.msra.mxu0 %v3367_v21 }
 0x1c2   :  { %2723 = vmatpush3.msra.mxu1 %v3367_v21  ;;  %2727 = vmatprep.subr.mxu0 %v3186_v11 }
 0x1c3   :  { %2738 = vmatprep.subr.mxu1 %v3186_v11 }
 0x273   :  { %v3390_v27 = vpop.f32.mrf.mxu1 }
 0x275   :  { %v3397_v31 = vpop.f32.mrf.mxu1 }
 0x276   :  { %v3421_v51 = vadd.f32 %v3417_v50, %v3397_v31 }
 0x277   :  { %v3465_v3 = vpop.f32.mrf.mxu0 }
 0x279   :  { %v3467_v4 = vpop.f32.mrf.mxu0 }
 0x27b   :  { %v612_v32 = vpop.f32.mrf.mxu1 }
 0x27c   :  { %v643_v33 = vadd.f32 %v3395_v30, %v612_v32  ;;  %v616_v41 = vadd.f32 %v612_v32, %v3397_v31 }
 0x27d   :  { %v2704_v34 = vpop.f32.mrf.mxu1 }
 0x27e   :  { %645 = vrot.lane.b32.xlu0 %v643_v33, %s3188_s2  ;;  %v623_v43 = vadd.f32 %v3412_v42, %v616_v41 }
 0x280   :  { %v2517_v44 = vmul.f32 -1.442695, %v623_v43 }
 0x282   :  { %2901 = vpow2.f32 %v2517_v44 }
 0x28f   :  { %v2902_v45 = vpop.eup %2901 }
 0x290   :  { %v627_v46 = vadd.f32 1.0, %v2902_v45 }
 0x292   :  { %2903 = vrcp.f32 %v627_v46 }
 0x29f   :  { %v2904_v47 = vpop.eup %2903 }
 0x2a0   :  { %v655_v61 = vsub.f32 1.0, %v2904_v47  ;;  %v661_v63 = vmul.f32 0.0, %v2904_v47 }
 0x2f0   :  { %v646_v48 = vpop.permute.xlu0 %645 }
 0x2f1   :  { %v648_v49 = vmul.f32 %v2904_v47, %v646_v48 }
 0x2f3   :  { %650 = vrot.lane.b32.xlu1 %v648_v49, %s3188_s2 }
 0x365   :  { %v651_v52 = vpop.permute.xlu1 %650 }
 0x366   :  { %v653_v53 = vadd.f32 %v651_v52, %v3421_v51 }
 0x368   :  { %2905 = vtanh.f32 %v653_v53 }
 0x375   :  { %v2906_v60 = vpop.eup %2905 }
 0x376   :  { %657 = vrot.lane.b32.xlu0 %v2906_v60, %s3189_s3 }
 0x3e8   :  { %v658_v62 = vpop.permute.xlu0 %657 }
 0x3e9   :  { %v660_v0 = vmul.f32 %v658_v62, %v655_v61 }
 0x3eb   :  { %v3450_v1 = vadd.f32 %v661_v63, %v660_v0 }
 0x3ed   :  { %668 = vrot.lane.b32.xlu1 %v3450_v1, %s3189_s3  ;;  %v772_v32 = vrot.slane %v3450_v1, 6 }
 0x45f   :  { %v669_v2 = vpop.permute.xlu1 %668 }
 0x460   :  { %2714 = vmatmul.mubr.msk.f32.vlgmr.msra.gmra.mxu0 %vm259_vm3, %v669_v2 }
 0x461   :  { %2728 = vmatpush3.msra.mxu0 %v3344_v18  ;;  %2735 = vmatprep.mubr.msk.f32.mxu0 %vm3187_vm4, %v3186_v11 }
 0x462   :  { %2729 = vmatprep.subr.mxu0 %v3186_v11 }
 0x463   :  { %2730 = vmatpush3.msra.mxu0 %v3351_v19 }
 0x464   :  { %2731 = vmatprep.subr.mxu0 %v3186_v11 }
 0x465   :  { %2732 = vmatpush3.msra.mxu0 %v3360_v20 }
 0x466   :  { %2733 = vmatprep.subr.mxu0 %v3186_v11 }
 0x467   :  { %2734 = vmatpush3.msra.mxu0 %v3367_v21 }
 0x468   :  { %2749 = vmatprep.subr.mxu0 %v3186_v11 }
 0x520   :  { %v738_v5 = vpop.f32.mrf.mxu0 }
 0x521   :  { %v753_v6 = vadd.f32 %v738_v5, %v3395_v30  ;;  %v743_v10 = vrot.slane %v738_v5, 6 }
 0x522   :  { %v2715_v7 = vpop.f32.mrf.mxu0 }
 0x523   :  { %v755_v8 = vrot.slane %v753_v6, 6  ;;  %v745_v12 = vadd.f32 %v743_v10, %v3397_v31 }
 0x525   :  { %756 = vrot.lane.b32.xlu0 %v755_v8, %s3188_s2  ;;  %v746_v13 = vadd.f32 %v745_v12, %v3412_v42 }
 0x527   :  { %v2519_v14 = vmul.f32 -1.442695, %v746_v13 }
 0x529   :  { %2907 = vpow2.f32 %v2519_v14 }
 0x536   :  { %v2908_v15 = vpop.eup %2907 }
 0x537   :  { %v750_v16 = vadd.f32 1.0, %v2908_v15 }
 0x539   :  { %2909 = vrcp.f32 %v750_v16 }
 0x546   :  { %v2910_v17 = vpop.eup %2909 }
 0x547   :  { %v766_v28 = vsub.f32 1.0, %v2910_v17  ;;  %v774_v35 = vmul.f32 %v2910_v17, %v772_v32 }
 0x597   :  { %v757_v22 = vpop.permute.xlu0 %756 }
 0x598   :  { %v759_v23 = vmul.f32 %v2910_v17, %v757_v22 }
 0x59a   :  { %761 = vrot.lane.b32.xlu1 %v759_v23, %s3188_s2 }
 0x60c   :  { %v762_v24 = vpop.permute.xlu1 %761 }
 0x60d   :  { %v764_v25 = vadd.f32 %v762_v24, %v3421_v51 }
 0x60f   :  { %2911 = vtanh.f32 %v764_v25 }
 0x61c   :  { %v2912_v26 = vpop.eup %2911 }
 0x61d   :  { %768 = vrot.lane.b32.xlu0 %v2912_v26, %s3189_s3 }
 0x68f   :  { %v769_v33 = vpop.permute.xlu0 %768 }
 0x690   :  { %v771_v34 = vmul.f32 %v769_v33, %v766_v28 }
 0x692   :  { %v775_v36 = vadd.f32 %v774_v35, %v771_v34 }
 0x694   :  { %v780_v37 = vrot.slane %v775_v36, 2  ;;  %v891_v58 = vrot.slane %v775_v36, 6 }
 0x696   :  { %781 = vrot.lane.b32.xlu1 %v780_v37, %s3189_s3 }
 0x708   :  { %v3478_v38 = vpop.permute.xlu1 %781 }
 0x709   :  { %2725 = vmatmul.mubr.msk.f32.vlgmr.msra.gmra.mxu1 %vm259_vm3, %v3478_v38 }
 0x70a   :  { %2739 = vmatpush3.msra.mxu1 %v3344_v18  ;;  %2746 = vmatprep.mubr.msk.f32.mxu1 %vm3187_vm4, %v3186_v11 }
 0x70b   :  { %2740 = vmatprep.subr.mxu1 %v3186_v11 }
 0x70c   :  { %2741 = vmatpush3.msra.mxu1 %v3351_v19 }
 0x70d   :  { %2742 = vmatprep.subr.mxu1 %v3186_v11 }
 0x70e   :  { %2743 = vmatpush3.msra.mxu1 %v3360_v20 }
 0x70f   :  { %2744 = vmatprep.subr.mxu1 %v3186_v11 }
 0x710   :  { %2745 = vmatpush3.msra.mxu1 %v3367_v21 }
 0x711   :  { %2760 = vmatprep.subr.mxu1 %v3186_v11 }
 0x7c9   :  { %v857_v39 = vpop.f32.mrf.mxu1 }
 0x7ca   :  { %v872_v40 = vadd.f32 %v857_v39, %v3395_v30  ;;  %v862_v44 = vrot.slane %v857_v39, 4 }
 0x7cb   :  { %v2726_v41 = vpop.f32.mrf.mxu1 }
 0x7cc   :  { %v874_v43 = vrot.slane %v872_v40, 4  ;;  %v864_v45 = vadd.f32 %v862_v44, %v3397_v31 }
 0x7ce   :  { %875 = vrot.lane.b32.xlu0 %v874_v43, %s3188_s2  ;;  %v865_v46 = vadd.f32 %v864_v45, %v3412_v42 }
 0x7d0   :  { %v2521_v47 = vmul.f32 -1.442695, %v865_v46 }
 0x7d2   :  { %2913 = vpow2.f32 %v2521_v47 }
 0x7df   :  { %v2914_v48 = vpop.eup %2913 }
 0x7e0   :  { %v869_v49 = vadd.f32 1.0, %v2914_v48 }
 0x7e2   :  { %2915 = vrcp.f32 %v869_v49 }
 0x7ef   :  { %v2916_v52 = vpop.eup %2915 }
 0x7f0   :  { %v885_v59 = vsub.f32 1.0, %v2916_v52  ;;  %v893_v61 = vmul.f32 %v2916_v52, %v891_v58 }
 0x840   :  { %v876_v53 = vpop.permute.xlu0 %875 }
 0x841   :  { %v878_v54 = vmul.f32 %v2916_v52, %v876_v53  ;;  %v3543_v52 = vadd.f32 %v3390_v27, %v3417_v50 }
 0x843   :  { %880 = vrot.lane.b32.xlu1 %v878_v54, %s3188_s2 }
 0x8b5   :  { %v881_v55 = vpop.permute.xlu1 %880 }
 0x8b6   :  { %v883_v56 = vadd.f32 %v881_v55, %v3421_v51 }
 0x8b8   :  { %2917 = vtanh.f32 %v883_v56 }
 0x8c5   :  { %v2918_v57 = vpop.eup %2917 }
 0x8c6   :  { %887 = vrot.lane.b32.xlu0 %v2918_v57, %s3189_s3 }
 0x938   :  { %v888_v60 = vpop.permute.xlu0 %887 }
 0x939   :  { %v890_v62 = vmul.f32 %v888_v60, %v885_v59 }
 0x93b   :  { %v894_v63 = vadd.f32 %v893_v61, %v890_v62 }
 0x93d   :  { %v899_v0 = vrot.slane %v894_v63, 4 }
 0x93f   :  { %900 = vrot.lane.b32.xlu1 %v899_v0, %s3189_s3 }
 0x9b1   :  { %v3500_v2 = vpop.permute.xlu1 %900 }
 0x9b2   :  { %2736 = vmatmul.mubr.msk.f32.vlgmr.msra.gmra.mxu0 %vm259_vm3, %v3500_v2 }
 0x9b3   :  { %2750 = vmatpush3.msra.mxu0 %v3344_v18  ;;  %2757 = vmatprep.mubr.msk.f32.mxu0 %vm3187_vm4, %v3186_v11 }
 0x9b4   :  { %2751 = vmatprep.subr.mxu0 %v3186_v11 }
 0x9b5   :  { %2752 = vmatpush3.msra.mxu0 %v3351_v19 }
 0x9b6   :  { %2753 = vmatprep.subr.mxu0 %v3186_v11 }
 0x9b7   :  { %2754 = vmatpush3.msra.mxu0 %v3360_v20 }
 0x9b8   :  { %2755 = vmatprep.subr.mxu0 %v3186_v11 }
 0x9b9   :  { %2756 = vmatpush3.msra.mxu0 %v3367_v21 }
 0x9ba   :  { %2771 = vmatprep.subr.mxu0 %v3186_v11 }
 0xa72   :  { %v972_v5 = vpop.f32.mrf.mxu0 }
 0xa73   :  { %v987_v6 = vadd.f32 %v972_v5, %v3395_v30  ;;  %v977_v10 = vrot.slane %v972_v5, 2 }
 0xa74   :  { %v2737_v7 = vpop.f32.mrf.mxu0 }
 0xa75   :  { %v989_v8 = vrot.slane %v987_v6, 2  ;;  %v979_v12 = vadd.f32 %v977_v10, %v3397_v31  ;;  %v1006_v31 = vrot.slane %v894_v63, 6 }
 0xa77   :  { %990 = vrot.lane.b32.xlu0 %v989_v8, %s3188_s2  ;;  %v980_v13 = vadd.f32 %v979_v12, %v3412_v42 }
 0xa79   :  { %v2523_v14 = vmul.f32 -1.442695, %v980_v13 }
 0xa7b   :  { %2919 = vpow2.f32 %v2523_v14 }
 0xa88   :  { %v2920_v15 = vpop.eup %2919 }
 0xa89   :  { %v984_v16 = vadd.f32 1.0, %v2920_v15 }
 0xa8b   :  { %2921 = vrcp.f32 %v984_v16 }
 0xa98   :  { %v2922_v17 = vpop.eup %2921 }
 0xa99   :  { %v1000_v28 = vsub.f32 1.0, %v2922_v17  ;;  %v1008_v33 = vmul.f32 %v2922_v17, %v1006_v31 }
 0xae9   :  { %v991_v22 = vpop.permute.xlu0 %990 }
 0xaea   :  { %v993_v23 = vmul.f32 %v2922_v17, %v991_v22 }
 0xaec   :  { %995 = vrot.lane.b32.xlu1 %v993_v23, %s3188_s2 }
 0xb5e   :  { %v996_v24 = vpop.permute.xlu1 %995 }
 0xb5f   :  { %v998_v25 = vadd.f32 %v996_v24, %v3421_v51 }
 0xb61   :  { %2923 = vtanh.f32 %v998_v25 }
 0xb6e   :  { %v2924_v26 = vpop.eup %2923 }
 0xb6f   :  { %1002 = vrot.lane.b32.xlu0 %v2924_v26, %s3189_s3 }
 0xbe1   :  { %v1003_v32 = vpop.permute.xlu0 %1002 }
 0xbe2   :  { %v1005_v34 = vmul.f32 %v1003_v32, %v1000_v28 }
 0xbe4   :  { %v1009_v35 = vadd.f32 %v1008_v33, %v1005_v34 }
 0xbe6   :  { %v1014_v36 = vrot.slane %v1009_v35, 6 }
 0xbe8   :  { %1015 = vrot.lane.b32.xlu1 %v1014_v36, %s3189_s3 }
 0xc5a   :  { %v3522_v37 = vpop.permute.xlu1 %1015 }
 0xc5b   :  { %2747 = vmatmul.mubr.msk.f32.vlgmr.msra.gmra.mxu1 %vm259_vm3, %v3522_v37 }
 0xc5c   :  { %2761 = vmatpush3.msra.mxu1 %v3344_v18  ;;  %2768 = vmatprep.mubr.msk.f32.mxu1 %vm3187_vm4, %v3186_v11 }
 0xc5d   :  { %2762 = vmatprep.subr.mxu1 %v3186_v11 }
 0xc5e   :  { %2763 = vmatpush3.msra.mxu1 %v3351_v19 }
 0xc5f   :  { %2764 = vmatprep.subr.mxu1 %v3186_v11 }
 0xc60   :  { %2765 = vmatpush3.msra.mxu1 %v3360_v20 }
 0xc61   :  { %2766 = vmatprep.subr.mxu1 %v3186_v11 }
 0xc62   :  { %2767 = vmatpush3.msra.mxu1 %v3367_v21 }
 0xc63   :  { %2782 = vmatprep.subr.mxu1 %v3186_v11 }
 0xd1b   :  { %v1087_v51 = vpop.f32.mrf.mxu1 }
 0xd1c   :  { %v1100_v39 = vadd.f32 %v1087_v51, %v3395_v30  ;;  %v1091_v41 = vadd.f32 %v3390_v27, %v1087_v51 }
 0xd1d   :  { %v2748_v40 = vpop.f32.mrf.mxu1 }
 0xd1e   :  { %1102 = vrot.lane.b32.xlu0 %v1100_v39, %s3188_s2  ;;  %v1092_v43 = vadd.f32 %v1091_v41, %v3412_v42 }
 0xd20   :  { %v2525_v44 = vmul.f32 -1.442695, %v1092_v43 }
 0xd22   :  { %2925 = vpow2.f32 %v2525_v44 }
 0xd2f   :  { %v2926_v45 = vpop.eup %2925 }
 0xd30   :  { %v1096_v46 = vadd.f32 1.0, %v2926_v45 }
 0xd32   :  { %2927 = vrcp.f32 %v1096_v46 }
 0xd3f   :  { %v2928_v47 = vpop.eup %2927 }
 0xd40   :  { %v1112_v56 = vsub.f32 1.0, %v2928_v47  ;;  %v1119_v58 = vmul.f32 %v2928_v47, %v1014_v36 }
 0xd90   :  { %v1103_v48 = vpop.permute.xlu0 %1102 }
 0xd91   :  { %v1105_v49 = vmul.f32 %v2928_v47, %v1103_v48  ;;  %v529_v48 = vld [vmem:[%s3859_s4] sm:$0x3] }
 0xd92   :  { %vm530_vm7 = vcmp.ne.s32.totalorder %v529_v48, 2 }
 0xd93   :  { %1107 = vrot.lane.b32.xlu1 %v1105_v49, %s3188_s2  ;;  %v2516_v49 = vsel %vm530_vm7, 1.0, %v3186_v11 }
 0xe05   :  { %v1108_v53 = vpop.permute.xlu1 %1107 }
 0xe06   :  { %v1110_v54 = vadd.f32 %v1108_v53, %v3543_v52  ;;  %v534_v53 = vsel %vm533_vm8, %v2516_v49, 0.0 }
 0xe08   :  { %2929 = vtanh.f32 %v1110_v54 }
 0xe15   :  { %v2930_v55 = vpop.eup %2929 }
 0xe16   :  { %1114 = vrot.lane.b32.xlu0 %v2930_v55, %s3189_s3 }
 0xe88   :  { %v1115_v57 = vpop.permute.xlu0 %1114 }
 0xe89   :  { %v1117_v59 = vmul.f32 %v1115_v57, %v1112_v56 }
 0xe8b   :  { %v3547_v60 = vadd.f32 %v1119_v58, %v1117_v59 }
 0xe8d   :  { %1130 = vrot.lane.b32.xlu1 %v3547_v60, %s3189_s3  ;;  %v1234_v16 = vrot.slane %v3547_v60, 6 }
 0xeff   :  { %v1131_v61 = vpop.permute.xlu1 %1130 }
 0xf00   :  { %2758 = vmatmul.mubr.msk.f32.vlgmr.msra.gmra.mxu0 %vm259_vm3, %v1131_v61 }
 0xf01   :  { %2772 = vmatpush3.msra.mxu0 %v3344_v18  ;;  %2779 = vmatprep.mubr.msk.f32.mxu0 %vm3187_vm4, %v3186_v11 }
 0xf02   :  { %2773 = vmatprep.subr.mxu0 %v3186_v11 }
 0xf03   :  { %2774 = vmatpush3.msra.mxu0 %v3351_v19 }
 0xf04   :  { %2775 = vmatprep.subr.mxu0 %v3186_v11 }
 0xf05   :  { %2776 = vmatpush3.msra.mxu0 %v3360_v20 }
 0xf06   :  { %2777 = vmatprep.subr.mxu0 %v3186_v11 }
 0xf07   :  { %2778 = vmatpush3.msra.mxu0 %v3367_v21 }
 0xf08   :  { %2793 = vmatprep.subr.mxu0 %v3186_v11 }
 0xfc0   :  { %v1200_v50 = vpop.f32.mrf.mxu0 }
 0xfc1   :  { %v1215_v18 = vadd.f32 %v1200_v50, %v3395_v30  ;;  %v1205_v0 = vrot.slane %v1200_v50, 6 }
 0xfc2   :  { %v2759_v62 = vpop.f32.mrf.mxu0 }
 0xfc3   :  { %v1217_v63 = vrot.slane %v1215_v18, 6  ;;  %v1207_v19 = vadd.f32 %v3390_v27, %v1205_v0 }
 0xfc5   :  { %1218 = vrot.lane.b32.xlu0 %v1217_v63, %s3188_s2  ;;  %v1208_v5 = vadd.f32 %v1207_v19, %v3412_v42 }
 0xfc7   :  { %v2527_v6 = vmul.f32 -1.442695, %v1208_v5 }
 0xfc9   :  { %2931 = vpow2.f32 %v2527_v6 }
 0xfd6   :  { %v2932_v20 = vpop.eup %2931 }
 0xfd7   :  { %v1212_v7 = vadd.f32 1.0, %v2932_v20 }
 0xfd9   :  { %2933 = vrcp.f32 %v1212_v7 }
 0xfe6   :  { %v2934_v21 = vpop.eup %2933 }
 0xfe7   :  { %v1228_v15 = vsub.f32 1.0, %v2934_v21  ;;  %v1236_v23 = vmul.f32 %v2934_v21, %v1234_v16 }
0x1037   :  { %v1219_v8 = vpop.permute.xlu0 %1218 }
0x1038   :  { %v1221_v10 = vmul.f32 %v2934_v21, %v1219_v8 }
0x103a   :  { %1223 = vrot.lane.b32.xlu1 %v1221_v10, %s3188_s2 }
0x10ac   :  { %v1224_v12 = vpop.permute.xlu1 %1223 }
0x10ad   :  { %v1226_v13 = vadd.f32 %v1224_v12, %v3543_v52 }
0x10af   :  { %2935 = vtanh.f32 %v1226_v13 }
0x10bc   :  { %v2936_v14 = vpop.eup %2935 }
0x10bd   :  { %1230 = vrot.lane.b32.xlu0 %v2936_v14, %s3189_s3 }
0x112f   :  { %v1231_v17 = vpop.permute.xlu0 %1230 }
0x1130   :  { %v1233_v22 = vmul.f32 %v1231_v17, %v1228_v15 }
0x1132   :  { %v1237_v24 = vadd.f32 %v1236_v23, %v1233_v22  ;;  %v1484_v22 = vld [vmem:[%s3846_s9 + $0x18] sm:$0xff] }
0x1134   :  { %v1242_v25 = vrot.slane %v1237_v24, 2  ;;  %v1353_v54 = vrot.slane %v1237_v24, 6 }
0x1136   :  { %1243 = vrot.lane.b32.xlu1 %v1242_v25, %s3189_s3  ;;  %v1483_v25 = vld [vmem:[%s3846_s9 + $0x10] sm:$0xff] }
0x11a8   :  { %v3571_v26 = vpop.permute.xlu1 %1243 }
0x11a9   :  { %2769 = vmatmul.mubr.msk.f32.vlgmr.msra.gmra.mxu1 %vm259_vm3, %v3571_v26 }
0x11aa   :  { %2790 = vmatprep.mubr.msk.f32.mxu1 %vm3187_vm4, %v3186_v11  ;;  %2783 = vmatpush3.msra.mxu1 %v1484_v22 }
0x11ab   :  { %2784 = vmatprep.subr.mxu1 %v3186_v11 }
0x11ac   :  { %2785 = vmatpush3.msra.mxu1 %v1483_v25 }
0x11ad   :  { %2786 = vmatprep.subr.mxu1 %v3186_v11 }
0x1269   :  { %v1319_v31 = vpop.f32.mrf.mxu1 }
0x126a   :  { %v1334_v28 = vadd.f32 %v1319_v31, %v3395_v30  ;;  %v1324_v34 = vrot.slane %v1319_v31, 4  ;;  %v3628_v31 = vld [vmem:[#allocation9 + $0x10] sm:$0xff] }
0x126b   :  { %v2770_v32 = vpop.f32.mrf.mxu1 }
0x126c   :  { %v1336_v33 = vrot.slane %v1334_v28, 4  ;;  %v1326_v35 = vadd.f32 %v3390_v27, %v1324_v34 }
0x126e   :  { %1337 = vrot.lane.b32.xlu0 %v1336_v33, %s3188_s2  ;;  %v1327_v36 = vadd.f32 %v1326_v35, %v3412_v42 }
0x1270   :  { %v2529_v51 = vmul.f32 -1.442695, %v1327_v36 }
0x1272   :  { %2937 = vpow2.f32 %v2529_v51 }
0x127f   :  { %v2938_v39 = vpop.eup %2937 }
0x1280   :  { %v1331_v40 = vadd.f32 1.0, %v2938_v39 }
0x1282   :  { %2939 = vrcp.f32 %v1331_v40 }
0x128f   :  { %v2940_v41 = vpop.eup %2939 }
0x1290   :  { %v1347_v55 = vsub.f32 1.0, %v2940_v41  ;;  %v1355_v57 = vmul.f32 %v2940_v41, %v1353_v54  ;;  %v526_v54 = vld [vmem:[#allocation12] sm:$0x1] }
0x12e0   :  { %v1338_v43 = vpop.permute.xlu0 %1337 }
0x12e1   :  { %v1340_v44 = vmul.f32 %v2940_v41, %v1338_v43 }
0x12e3   :  { %1342 = vrot.lane.b32.xlu1 %v1340_v44, %s3188_s2 }
0x1355   :  { %v1343_v45 = vpop.permute.xlu1 %1342 }
0x1356   :  { %v1345_v46 = vadd.f32 %v1343_v45, %v3543_v52 }
0x1358   :  { %2941 = vtanh.f32 %v1345_v46 }
0x1365   :  { %v2942_v47 = vpop.eup %2941 }
0x1366   :  { %1349 = vrot.lane.b32.xlu0 %v2942_v47, %s3189_s3  ;;  %v2532_v47 = vld [vmem:[#allocation7] ss:$0 sm:$0xff] }
0x1385   :  { %535 = vadd.xlane.f32.xlu0 %v534_v53 }
0x13d8   :  { %v1350_v56 = vpop.permute.xlu0 %1349 }
0x13d9   :  { %v1352_v58 = vmul.f32 %v1350_v56, %v1347_v55  ;;  %v3672_v55 = vrot.slane %v526_v54, %v3392_v29 }
0x13db   :  { %v3588_v59 = vadd.f32 %v1355_v57, %v1352_v58 }
0x13dd   :  { %v1361_v61 = vrot.slane %v3588_v59, 4  ;;  %v1468_v32 = vrot.slane %v3588_v59, 6  ;;  %v525_v59 = vld [vmem:[#allocation10] sm:$0x1] }
0x13df   :  { %1362 = vrot.lane.b32.xlu1 %v1361_v61, %s3189_s3  ;;  %v528_v61 = vadd.f32 %v526_v54, %v525_v59 }
0x140e   :  { %v536_v8 = vpop.xlane.xlu0 %535 }
0x140f   :  { %v537_v10 = vmin.f32 %v536_v8, 7.0 }
0x1411   :  { %v2881_v12 = vtrunc.f32 %v537_v10 }
0x1413   :  { %v2882_v13 = vcvt.f32.s32 %v2881_v12 }
0x1415   :  { %vm663_vm9 = vcmp.eq.s32.totalorder %v2882_v13, 0  ;;  %vm776_vm10 = vcmp.eq.s32.totalorder %v2882_v13, 1  ;;  %vm895_vm11 = vcmp.eq.s32.totalorder %v2882_v13, 2  ;;  %vm1010_vm12 = vcmp.eq.s32.totalorder %v2882_v13, 3 }
0x1416   :  { %v666_v16 = vsel %vm663_vm9, %v3450_v1, 0.0  ;;  %vm1121_vm13 = vcmp.eq.s32.totalorder %v2882_v13, 4  ;;  %vm1238_vm14 = vcmp.eq.s32.totalorder %v2882_v13, 5  ;;  %vm1357_vm15 = vcmp.eq.s32.totalorder %v2882_v13, 6 }
0x1417   :  { %vm1472_vm1 = vcmp.eq.s32.totalorder %v2882_v13, 7 }
0x1451   :  { %v3592_v50 = vpop.permute.xlu1 %1362 }
0x1452   :  { %2780 = vmatmul.mubr.msk.f32.vlgmr.msra.gmra.mxu0 %vm259_vm3, %v3592_v50 }
0x1453   :  { %2801 = vmatprep.mubr.msk.f32.mxu0 %vm3187_vm4, %v3186_v11 }
0x1512   :  { %v1434_v18 = vpop.f32.mrf.mxu0 }
0x1513   :  { %v1449_v62 = vadd.f32 %v1434_v18, %v3395_v30  ;;  %v1439_v19 = vrot.slane %v1434_v18, 2  ;;  %v3678_v18 = vrot.slane %v528_v61, %v3392_v29 }
0x1514   :  { %v2781_v63 = vpop.f32.mrf.mxu0 }
0x1515   :  { %v1451_v0 = vrot.slane %v1449_v62, 2  ;;  %v1441_v5 = vadd.f32 %v3390_v27, %v1439_v19 }
0x1517   :  { %1452 = vrot.lane.b32.xlu1 %v1451_v0, %s3188_s2  ;;  %v1442_v6 = vadd.f32 %v1441_v5, %v3412_v42 }
0x1519   :  { %v2531_v20 = vmul.f32 -1.442695, %v1442_v6 }
0x151b   :  { %2943 = vpow2.f32 %v2531_v20 }
0x1528   :  { %v2944_v7 = vpop.eup %2943 }
0x1529   :  { %v1446_v21 = vadd.f32 1.0, %v2944_v7  ;;  %v3683_v7 = vrot.slane %v525_v59, %v3392_v29 }
0x152b   :  { %2945 = vrcp.f32 %v1446_v21  ;;  %v3687_v21 = vadd.f32 %v3683_v7, %v3467_v4 }
0x1538   :  { %v2946_v14 = vpop.eup %2945 }
0x1539   :  { %v1462_v28 = vsub.f32 1.0, %v2946_v14  ;;  %v1470_v35 = vmul.f32 %v2946_v14, %v1468_v32 }
0x1589   :  { %v1453_v30 = vpop.permute.xlu1 %1452 }
0x158a   :  { %v1455_v15 = vmul.f32 %v2946_v14, %v1453_v30 }
0x158c   :  { %1457 = vrot.lane.b32.xlu1 %v1455_v15, %s3188_s2 }
0x1590   :  { %785 = vrot.lane.b32.xlu1 %v666_v16, %s3189_s3 }
0x15fe   :  { %v1458_v27 = vpop.permute.xlu1 %1457 }
0x15ff   :  { %v1460_v42 = vadd.f32 %v1458_v27, %v3543_v52 }
0x1601   :  { %2947 = vtanh.f32 %v1460_v42 }
0x1602   :  { %v786_v17 = vpop.permute.xlu1 %785 }
0x1603   :  { %v788_v23 = vsel %vm776_vm10, %v3478_v38, %v786_v17  ;;  %v1482_v38 = vld [vmem:[%s3846_s9 + $0x8] sm:$0xff] }
0x1604   :  { %v903_v1 = vsel %vm895_vm11, %v3500_v2, %v788_v23  ;;  %2787 = vmatpush3.msra.mxu1 %v1482_v38  ;;  %v1481_v2 = vld [vmem:[%s3846_s9] sm:$0xff] }
0x1605   :  { %v1018_v52 = vsel %vm1010_vm12, %v3522_v37, %v903_v1  ;;  %2788 = vmatprep.subr.mxu1 %v3186_v11  ;;  %v3626_v37 = vld [vmem:[#allocation9 + $0x18] sm:$0xff] }
0x1606   :  { %2789 = vmatpush3.msra.mxu1 %v1481_v2  ;;  %2794 = vmatpush3.msra.mxu0 %v3626_v37 }
0x1607   :  { %2804 = vmatprep.subr.mxu1 %v3186_v11  ;;  %2795 = vmatprep.subr.mxu0 %v3186_v11 }
0x1608   :  { %2796 = vmatpush3.msra.mxu0 %v3628_v31 }
0x1609   :  { %2797 = vmatprep.subr.mxu0 %v3186_v11 }
0x160e   :  { %v2948_v24 = vpop.eup %2947 }
0x160f   :  { %1464 = vrot.lane.b32.xlu1 %v2948_v24, %s3189_s3 }
0x1613   :  { %1125 = vrot.lane.b32.xlu1 %v1018_v52, %s3190_s18 }
0x1681   :  { %v1465_v33 = vpop.permute.xlu1 %1464 }
0x1682   :  { %v1467_v34 = vmul.f32 %v1465_v33, %v1462_v28 }
0x1684   :  { %v1471_v36 = vadd.f32 %v1470_v35, %v1467_v34 }
0x1685   :  { %v1126_v51 = vpop.permute.xlu1 %1125 }
0x1686   :  { %v1128_v39 = vsel %vm1121_vm13, %v3547_v60, %v1126_v51  ;;  %v1476_v40 = vrot.slane %v1471_v36, 6  ;;  %v3648_v60 = vld [vmem:[#allocation9 + $0x8] sm:$0xff] }
0x1687   :  { %1247 = vrot.lane.b32.xlu1 %v1128_v39, %s3189_s3  ;;  %2798 = vmatpush3.msra.mxu0 %v3648_v60 }
0x1688   :  { %2799 = vmatprep.subr.mxu0 %v3186_v11 }
0x168b   :  { %1477 = vrot.lane.b32.xlu1 %v1476_v40, %s3189_s3 }
0x16f9   :  { %v1248_v41 = vpop.permute.xlu1 %1247 }
0x16fa   :  { %v1250_v43 = vsel %vm1238_vm14, %v3571_v26, %v1248_v41  ;;  %v3653_v26 = vld [vmem:[#allocation9] sm:$0xff] }
0x16fb   :  { %v1365_v44 = vsel %vm1357_vm15, %v3592_v50, %v1250_v43  ;;  %2800 = vmatpush3.msra.mxu0 %v3653_v26 }
0x16fc   :  { %2815 = vmatprep.subr.mxu0 %v3186_v11 }
0x16fd   :  { %v1478_v45 = vpop.permute.xlu1 %1477 }
0x16fe   :  { %v1480_v46 = vsel %vm1472_vm1, %v1478_v45, %v1365_v44 }
0x16ff   :  { %2791 = vmatmul.mubr.msk.f32.vlgmr.msra.gmra.mxu1 %vm259_vm3, %v1480_v46 }
0x1700   :  { %2805 = vmatpush3.msra.mxu1 %v3626_v37  ;;  %2812 = vmatprep.mubr.msk.f32.mxu1 %vm3187_vm4, %v3186_v11 }
0x1701   :  { %2806 = vmatprep.subr.mxu1 %v3186_v11 }
0x1702   :  { %2807 = vmatpush3.msra.mxu1 %v3628_v31 }
0x1703   :  { %2808 = vmatprep.subr.mxu1 %v3186_v11 }
0x1704   :  { %2809 = vmatpush3.msra.mxu1 %v3648_v60 }
0x1705   :  { %2810 = vmatprep.subr.mxu1 %v3186_v11 }
0x1706   :  { %2811 = vmatpush3.msra.mxu1 %v3653_v26 }
0x1707   :  { %2826 = vmatprep.subr.mxu1 %v3186_v11 }
0x17bf   :  { %v1561_v48 = vpop.f32.mrf.mxu1 }
0x17c0   :  { %v1562_v49 = vadd.f32 %v2532_v47, %v1561_v48 }
0x17c1   :  { %v2792_v53 = vpop.f32.mrf.mxu1 }
0x17c2   :  { %2802 = vmatmul.mubr.msk.f32.vlgmr.msra.gmra.mxu0 %vm259_vm3, %v1562_v49 }
0x17c3   :  { %2816 = vmatpush3.msra.mxu0 %v3626_v37  ;;  %2823 = vmatprep.mubr.msk.f32.mxu0 %vm3187_vm4, %v3186_v11 }
0x17c4   :  { %2817 = vmatprep.subr.mxu0 %v3186_v11 }
0x17c5   :  { %2818 = vmatpush3.msra.mxu0 %v3628_v31 }
0x17c6   :  { %2819 = vmatprep.subr.mxu0 %v3186_v11 }
0x17c7   :  { %2820 = vmatpush3.msra.mxu0 %v3648_v60 }
0x17c8   :  { %2821 = vmatprep.subr.mxu0 %v3186_v11 }
0x17c9   :  { %2822 = vmatpush3.msra.mxu0 %v3653_v26 }
0x17ca   :  { %2837 = vmatprep.subr.mxu0 %v3186_v11 }
0x1882   :  { %v1638_v56 = vpop.f32.mrf.mxu0 }
0x1883   :  { %v1669_v57 = vadd.f32 %v3672_v55, %v1638_v56  ;;  %v1642_v50 = vadd.f32 %v1638_v56, %v3467_v4 }
0x1884   :  { %v2803_v58 = vpop.f32.mrf.mxu0 }
0x1885   :  { %1671 = vrot.lane.b32.xlu1 %v1669_v57, %s3188_s2  ;;  %v1649_v62 = vadd.f32 %v3678_v18, %v1642_v50 }
0x1887   :  { %v2535_v63 = vmul.f32 -1.442695, %v1649_v62 }
0x1889   :  { %2949 = vpow2.f32 %v2535_v63 }
0x1896   :  { %v2950_v0 = vpop.eup %2949 }
0x1897   :  { %v1653_v19 = vadd.f32 1.0, %v2950_v0 }
0x1899   :  { %2951 = vrcp.f32 %v1653_v19 }
0x18a6   :  { %v2952_v5 = vpop.eup %2951 }
0x18a7   :  { %v1681_v14 = vsub.f32 1.0, %v2952_v5 }
0x18f7   :  { %v1672_v6 = vpop.permute.xlu1 %1671 }
0x18f8   :  { %v1674_v20 = vmul.f32 %v2952_v5, %v1672_v6 }
0x18fa   :  { %1676 = vrot.lane.b32.xlu0 %v1674_v20, %s3188_s2 }
0x196c   :  { %v1677_v8 = vpop.permute.xlu0 %1676 }
0x196d   :  { %v1679_v10 = vadd.f32 %v1677_v8, %v3687_v21 }
0x196f   :  { %2953 = vtanh.f32 %v1679_v10 }
0x197c   :  { %v2954_v12 = vpop.eup %2953 }
0x197d   :  { %1683 = vrot.lane.b32.xlu1 %v2954_v12, %s3189_s3 }
0x1981   :  { %1687 = vrot.lane.b32.xlu1 %v1562_v49, %s3190_s18 }
0x19ef   :  { %v1684_v13 = vpop.permute.xlu1 %1683 }
0x19f0   :  { %v1686_v15 = vmul.f32 %v1684_v13, %v1681_v14 }
0x19f3   :  { %v1688_v30 = vpop.permute.xlu1 %1687 }
0x19f4   :  { %v1690_v16 = vmul.f32 %v2952_v5, %v1688_v30 }
0x19f6   :  { %v3692_v29 = vadd.f32 %v1690_v16, %v1686_v15 }
0x19f8   :  { %1693 = vrot.lane.b32.xlu1 %v3692_v29, %s3189_s3  ;;  %v1797_v39 = vrot.slane %v3692_v29, 6 }
0x1a6a   :  { %v1694_v27 = vpop.permute.xlu1 %1693 }
0x1a6b   :  { %2813 = vmatmul.mubr.msk.f32.vlgmr.msra.gmra.mxu1 %vm259_vm3, %v1694_v27 }
0x1a6c   :  { %2827 = vmatpush3.msra.mxu1 %v3626_v37  ;;  %2834 = vmatprep.mubr.msk.f32.mxu1 %vm3187_vm4, %v3186_v11 }
0x1a6d   :  { %2828 = vmatprep.subr.mxu1 %v3186_v11 }
0x1a6e   :  { %2829 = vmatpush3.msra.mxu1 %v3628_v31 }
0x1a6f   :  { %2830 = vmatprep.subr.mxu1 %v3186_v11 }
0x1a70   :  { %2831 = vmatpush3.msra.mxu1 %v3648_v60 }
0x1a71   :  { %2832 = vmatprep.subr.mxu1 %v3186_v11 }
0x1a72   :  { %2833 = vmatpush3.msra.mxu1 %v3653_v26 }
0x1a73   :  { %2848 = vmatprep.subr.mxu1 %v3186_v11 }
0x1b2b   :  { %v1763_v42 = vpop.f32.mrf.mxu1 }
0x1b2c   :  { %v1778_v17 = vadd.f32 %v1763_v42, %v3672_v55  ;;  %v1768_v24 = vrot.slane %v1763_v42, 6 }
0x1b2d   :  { %v2814_v22 = vpop.f32.mrf.mxu1 }
0x1b2e   :  { %v1780_v23 = vrot.slane %v1778_v17, 6  ;;  %v1770_v1 = vadd.f32 %v1768_v24, %v3467_v4 }
0x1b30   :  { %1781 = vrot.lane.b32.xlu1 %v1780_v23, %s3188_s2  ;;  %v1771_v52 = vadd.f32 %v1770_v1, %v3678_v18 }
0x1b32   :  { %v2537_v25 = vmul.f32 -1.442695, %v1771_v52 }
0x1b34   :  { %2955 = vpow2.f32 %v2537_v25 }
0x1b41   :  { %v2956_v38 = vpop.eup %2955 }
0x1b42   :  { %v1775_v2 = vadd.f32 1.0, %v2956_v38 }
0x1b44   :  { %2957 = vrcp.f32 %v1775_v2 }
0x1b51   :  { %v2958_v28 = vpop.eup %2957 }
0x1b52   :  { %v1791_v51 = vsub.f32 1.0, %v2958_v28  ;;  %v1799_v41 = vmul.f32 %v2958_v28, %v1797_v39 }
0x1ba2   :  { %v1782_v32 = vpop.permute.xlu1 %1781 }
0x1ba3   :  { %v1784_v33 = vmul.f32 %v2958_v28, %v1782_v32 }
0x1ba5   :  { %1786 = vrot.lane.b32.xlu1 %v1784_v33, %s3188_s2 }
0x1c17   :  { %v1787_v34 = vpop.permute.xlu1 %1786 }
0x1c18   :  { %v1789_v35 = vadd.f32 %v1787_v34, %v3687_v21 }
0x1c1a   :  { %2959 = vtanh.f32 %v1789_v35 }
0x1c27   :  { %v2960_v36 = vpop.eup %2959 }
0x1c28   :  { %1793 = vrot.lane.b32.xlu1 %v2960_v36, %s3189_s3 }
0x1c9a   :  { %v1794_v40 = vpop.permute.xlu1 %1793 }
0x1c9b   :  { %v1796_v43 = vmul.f32 %v1794_v40, %v1791_v51 }
0x1c9d   :  { %v1800_v44 = vadd.f32 %v1799_v41, %v1796_v43 }
0x1c9f   :  { %v1802_v45 = vrot.slane %v1800_v44, 2  ;;  %v1907_v20 = vrot.slane %v1800_v44, 6  ;;  %v2347_v14 = vsel %vm2346_vm2, %v3692_v29, %v1800_v44 }
0x1ca1   :  { %1803 = vrot.lane.b32.xlu0 %v1802_v45, %s3189_s3 }
0x1d13   :  { %v1804_v46 = vpop.permute.xlu0 %1803 }
0x1d14   :  { %2824 = vmatmul.mubr.msk.f32.vlgmr.msra.gmra.mxu0 %vm259_vm3, %v1804_v46 }
0x1d15   :  { %2838 = vmatpush3.msra.mxu0 %v3626_v37  ;;  %2845 = vmatprep.mubr.msk.f32.mxu0 %vm3187_vm4, %v3186_v11 }
0x1d16   :  { %2839 = vmatprep.subr.mxu0 %v3186_v11 }
0x1d17   :  { %2840 = vmatpush3.msra.mxu0 %v3628_v31 }
0x1d18   :  { %2841 = vmatprep.subr.mxu0 %v3186_v11 }
0x1d19   :  { %2842 = vmatpush3.msra.mxu0 %v3648_v60 }
0x1d1a   :  { %2843 = vmatprep.subr.mxu0 %v3186_v11 }
0x1d1b   :  { %2844 = vmatpush3.msra.mxu0 %v3653_v26 }
0x1d1c   :  { %2859 = vmatprep.subr.mxu0 %v3186_v11 }
0x1dd4   :  { %v1873_v47 = vpop.f32.mrf.mxu0 }
0x1dd5   :  { %v1888_v48 = vadd.f32 %v1873_v47, %v3672_v55  ;;  %v1878_v54 = vrot.slane %v1873_v47, 4 }
0x1dd6   :  { %v2825_v49 = vpop.f32.mrf.mxu0 }
0x1dd7   :  { %v1890_v53 = vrot.slane %v1888_v48, 4  ;;  %v1880_v56 = vadd.f32 %v1878_v54, %v3467_v4 }
0x1dd9   :  { %1891 = vrot.lane.b32.xlu1 %v1890_v53, %s3188_s2  ;;  %v1881_v57 = vadd.f32 %v1880_v56, %v3678_v18 }
0x1ddb   :  { %v2539_v58 = vmul.f32 -1.442695, %v1881_v57 }
0x1ddd   :  { %2961 = vpow2.f32 %v2539_v58 }
0x1dea   :  { %v2962_v59 = vpop.eup %2961 }
0x1deb   :  { %v1885_v61 = vadd.f32 1.0, %v2962_v59 }
0x1ded   :  { %2963 = vrcp.f32 %v1885_v61 }
0x1dfa   :  { %v2964_v50 = vpop.eup %2963 }
0x1dfb   :  { %v1901_v6 = vsub.f32 1.0, %v2964_v50  ;;  %v1909_v10 = vmul.f32 %v2964_v50, %v1907_v20 }
0x1e4b   :  { %v1892_v62 = vpop.permute.xlu1 %1891 }
0x1e4c   :  { %v1894_v63 = vmul.f32 %v2964_v50, %v1892_v62 }
0x1e4e   :  { %1896 = vrot.lane.b32.xlu0 %v1894_v63, %s3188_s2 }
0x1ec0   :  { %v1897_v0 = vpop.permute.xlu0 %1896 }
0x1ec1   :  { %v1899_v19 = vadd.f32 %v1897_v0, %v3687_v21 }
0x1ec3   :  { %2965 = vtanh.f32 %v1899_v19 }
0x1ed0   :  { %v2966_v5 = vpop.eup %2965 }
0x1ed1   :  { %1903 = vrot.lane.b32.xlu1 %v2966_v5, %s3189_s3 }
0x1f43   :  { %v1904_v8 = vpop.permute.xlu1 %1903 }
0x1f44   :  { %v1906_v12 = vmul.f32 %v1904_v8, %v1901_v6 }
0x1f46   :  { %v1910_v13 = vadd.f32 %v1909_v10, %v1906_v12 }
0x1f48   :  { %v1912_v30 = vrot.slane %v1910_v13, 4  ;;  %v2349_v15 = vsel %vm2348_vm5, %v2347_v14, %v1910_v13  ;;  %v2017_v35 = vrot.slane %v1910_v13, 6 }
0x1f4a   :  { %1913 = vrot.lane.b32.xlu0 %v1912_v30, %s3189_s3 }
0x1fbc   :  { %v1914_v16 = vpop.permute.xlu0 %1913 }
0x1fbd   :  { %2835 = vmatmul.mubr.msk.f32.vlgmr.msra.gmra.mxu1 %vm259_vm3, %v1914_v16 }
0x1fbe   :  { %2849 = vmatpush3.msra.mxu1 %v3626_v37  ;;  %2856 = vmatprep.mubr.msk.f32.mxu1 %vm3187_vm4, %v3186_v11 }
0x1fbf   :  { %2850 = vmatprep.subr.mxu1 %v3186_v11 }
0x1fc0   :  { %2851 = vmatpush3.msra.mxu1 %v3628_v31 }
0x1fc1   :  { %2852 = vmatprep.subr.mxu1 %v3186_v11 }
0x1fc2   :  { %2853 = vmatpush3.msra.mxu1 %v3648_v60 }
0x1fc3   :  { %2854 = vmatprep.subr.mxu1 %v3186_v11 }
0x1fc4   :  { %2855 = vmatpush3.msra.mxu1 %v3653_v26 }
0x207d   :  { %v1983_v29 = vpop.f32.mrf.mxu1 }
0x207e   :  { %v1998_v27 = vadd.f32 %v1983_v29, %v3672_v55  ;;  %v1988_v22 = vrot.slane %v1983_v29, 2 }
0x207f   :  { %v2836_v42 = vpop.f32.mrf.mxu1 }
0x2080   :  { %v2000_v17 = vrot.slane %v1998_v27, 2  ;;  %v1990_v23 = vadd.f32 %v1988_v22, %v3467_v4 }
0x2082   :  { %2001 = vrot.lane.b32.xlu1 %v2000_v17, %s3188_s2  ;;  %v1991_v24 = vadd.f32 %v1990_v23, %v3678_v18 }
0x2084   :  { %v2541_v1 = vmul.f32 -1.442695, %v1991_v24 }
0x2086   :  { %2967 = vpow2.f32 %v2541_v1 }
0x2093   :  { %v2968_v52 = vpop.eup %2967 }
0x2094   :  { %v1995_v25 = vadd.f32 1.0, %v2968_v52 }
0x2096   :  { %2969 = vrcp.f32 %v1995_v25 }
0x20a3   :  { %v2970_v38 = vpop.eup %2969 }
0x20a4   :  { %v2011_v4 = vsub.f32 1.0, %v2970_v38  ;;  %v2019_v51 = vmul.f32 %v2970_v38, %v2017_v35 }
0x20f4   :  { %v2002_v2 = vpop.permute.xlu1 %2001 }
0x20f5   :  { %v2004_v28 = vmul.f32 %v2970_v38, %v2002_v2 }
0x20f7   :  { %2006 = vrot.lane.b32.xlu0 %v2004_v28, %s3188_s2 }
0x2169   :  { %v2007_v32 = vpop.permute.xlu0 %2006 }
0x216a   :  { %v2009_v33 = vadd.f32 %v2007_v32, %v3687_v21 }
0x216c   :  { %2971 = vtanh.f32 %v2009_v33 }
0x2179   :  { %v2972_v34 = vpop.eup %2971 }
0x217a   :  { %2013 = vrot.lane.b32.xlu1 %v2972_v34, %s3189_s3 }
0x21ec   :  { %v2014_v36 = vpop.permute.xlu1 %2013 }
0x21ed   :  { %v2016_v39 = vmul.f32 %v2014_v36, %v2011_v4 }
0x21ef   :  { %v2020_v40 = vadd.f32 %v2019_v51, %v2016_v39 }
0x21f1   :  { %v2022_v41 = vrot.slane %v2020_v40, 6  ;;  %v3755_v43 = vsel %vm2350_vm6, %v2349_v15, %v2020_v40 }
0x21f3   :  { %2023 = vrot.lane.b32.xlu0 %v2022_v41, %s3189_s3 }
0x2265   :  { %v2024_v44 = vpop.permute.xlu0 %2023 }
0x2266   :  { %2846 = vmatmul.mubr.msk.f32.vlgmr.msra.gmra.mxu0 %vm259_vm3, %v2024_v44 }
0x2267   :  { %2860 = vmatpush3.msra.mxu0 %v3626_v37  ;;  %2867 = vmatprep.mubr.msk.f32.mxu0 %vm3187_vm4, %v3186_v11  ;;  %vm2453_vm4 = vcmask 128000  }
0x2268   :  { %2861 = vmatprep.subr.mxu0 %v3186_v11 }
0x2269   :  { %2862 = vmatpush3.msra.mxu0 %v3628_v31 }
0x226a   :  { %2863 = vmatprep.subr.mxu0 %v3186_v11 }
0x226b   :  { %2864 = vmatpush3.msra.mxu0 %v3648_v60 }
0x226c   :  { %2865 = vmatprep.subr.mxu0 %v3186_v11 }
0x226d   :  { %2866 = vmatpush3.msra.mxu0 %v3653_v26  ;;  %v3775_v26 = vadd.f32 %v3465_v3, %v3683_v7 }
0x2326   :  { %v2093_v21 = vpop.f32.mrf.mxu0 }
0x2327   :  { %v2106_v45 = vadd.f32 %v2093_v21, %v3672_v55  ;;  %v2097_v37 = vadd.f32 %v3465_v3, %v2093_v21 }
0x2328   :  { %v2847_v46 = vpop.f32.mrf.mxu0 }
0x2329   :  { %2108 = vrot.lane.b32.xlu1 %v2106_v45, %s3188_s2  ;;  %v2098_v47 = vadd.f32 %v2097_v37, %v3678_v18  ;;  %v2356_v45 = vld [vmem:[%s3852_s15 + $0x10] sm:$0xff]  ;;  %v2354_v46 = vld [vmem:[%s3852_s15] sm:$0xff] }
0x232b   :  { %v2543_v48 = vmul.f32 -1.442695, %v2098_v47 }
0x232d   :  { %2973 = vpow2.f32 %v2543_v48 }
0x233a   :  { %v2974_v31 = vpop.eup %2973 }
0x233b   :  { %v2102_v49 = vadd.f32 1.0, %v2974_v31 }
0x233d   :  { %2975 = vrcp.f32 %v2102_v49 }
0x234a   :  { %v2976_v60 = vpop.eup %2975 }
0x234b   :  { %v2118_v59 = vsub.f32 1.0, %v2976_v60  ;;  %v2125_v50 = vmul.f32 %v2976_v60, %v2022_v41 }
0x239b   :  { %v2109_v53 = vpop.permute.xlu1 %2108 }
0x239c   :  { %v2111_v54 = vmul.f32 %v2976_v60, %v2109_v53 }
0x239e   :  { %2113 = vrot.lane.b32.xlu0 %v2111_v54, %s3188_s2 }
0x2410   :  { %v2114_v56 = vpop.permute.xlu0 %2113 }
0x2411   :  { %v2116_v57 = vadd.f32 %v2114_v56, %v3775_v26 }
0x2413   :  { %2977 = vtanh.f32 %v2116_v57  ;;  %v2548_v57 = vld [vmem:[#allocation13] ss:$0 sm:$0xff] }
0x2420   :  { %v2978_v58 = vpop.eup %2977 }
0x2421   :  { %2120 = vrot.lane.b32.xlu1 %v2978_v58, %s3189_s3 }
0x2493   :  { %v2121_v61 = vpop.permute.xlu1 %2120 }
0x2494   :  { %v2123_v62 = vmul.f32 %v2121_v61, %v2118_v59 }
0x2496   :  { %v3779_v63 = vadd.f32 %v2125_v50, %v2123_v62 }
0x2498   :  { %2128 = vrot.lane.b32.xlu0 %v3779_v63, %s3189_s3  ;;  %v2232_v22 = vrot.slane %v3779_v63, 6 }
0x250a   :  { %v2129_v0 = vpop.permute.xlu0 %2128 }
0x250b   :  { %2857 = vmatmul.mubr.msk.f32.vlgmr.msra.gmra.mxu1 %vm259_vm3, %v2129_v0 }
0x25cb   :  { %v2198_v7 = vpop.f32.mrf.mxu1 }
0x25cc   :  { %v2213_v19 = vadd.f32 %v2198_v7, %v3672_v55  ;;  %v2203_v20 = vrot.slane %v2198_v7, 6 }
0x25cd   :  { %v2858_v5 = vpop.f32.mrf.mxu1 }
0x25ce   :  { %v2215_v6 = vrot.slane %v2213_v19, 6  ;;  %v2205_v8 = vadd.f32 %v3465_v3, %v2203_v20 }
0x25d0   :  { %2216 = vrot.lane.b32.xlu1 %v2215_v6, %s3188_s2  ;;  %v2206_v10 = vadd.f32 %v2205_v8, %v3678_v18 }
0x25d2   :  { %v2545_v12 = vmul.f32 -1.442695, %v2206_v10 }
0x25d4   :  { %2979 = vpow2.f32 %v2545_v12 }
0x25e1   :  { %v2980_v13 = vpop.eup %2979 }
0x25e2   :  { %v2210_v14 = vadd.f32 1.0, %v2980_v13 }
0x25e4   :  { %2981 = vrcp.f32 %v2210_v14 }
0x25f1   :  { %v2982_v30 = vpop.eup %2981 }
0x25f2   :  { %v2226_v17 = vsub.f32 1.0, %v2982_v30  ;;  %v2234_v24 = vmul.f32 %v2982_v30, %v2232_v22 }
0x2642   :  { %v2217_v15 = vpop.permute.xlu1 %2216 }
0x2643   :  { %v2219_v16 = vmul.f32 %v2982_v30, %v2217_v15 }
0x2645   :  { %2221 = vrot.lane.b32.xlu0 %v2219_v16, %s3188_s2 }
0x26b7   :  { %v2222_v29 = vpop.permute.xlu0 %2221 }
0x26b8   :  { %v2224_v27 = vadd.f32 %v2222_v29, %v3775_v26 }
0x26ba   :  { %2983 = vtanh.f32 %v2224_v27 }
0x26c7   :  { %v2984_v42 = vpop.eup %2983 }
0x26c8   :  { %2228 = vrot.lane.b32.xlu1 %v2984_v42, %s3189_s3 }
0x273a   :  { %v2229_v23 = vpop.permute.xlu1 %2228 }
0x273b   :  { %v2231_v1 = vmul.f32 %v2229_v23, %v2226_v17 }
0x273d   :  { %v2235_v52 = vadd.f32 %v2234_v24, %v2231_v1 }
0x273f   :  { %v2237_v25 = vrot.slane %v2235_v52, 2  ;;  %v2342_v48 = vrot.slane %v2235_v52, 6  ;;  %v2352_v54 = vsel %vm2346_vm2, %v3779_v63, %v2235_v52 }
0x2741   :  { %2238 = vrot.lane.b32.xlu0 %v2237_v25, %s3189_s3 }
0x27b3   :  { %v2239_v38 = vpop.permute.xlu0 %2238 }
0x27b4   :  { %2868 = vmatmul.mubr.msk.f32.vlgmr.msra.gmra.mxu0 %vm259_vm3, %v2239_v38 }
0x2874   :  { %v2308_v2 = vpop.f32.mrf.mxu0 }
0x2875   :  { %v2323_v28 = vadd.f32 %v2308_v2, %v3672_v55  ;;  %v2313_v34 = vrot.slane %v2308_v2, 4 }
0x2876   :  { %v2869_v32 = vpop.f32.mrf.mxu0 }
0x2877   :  { %v2325_v33 = vrot.slane %v2323_v28, 4  ;;  %v2315_v4 = vadd.f32 %v3465_v3, %v2313_v34 }
0x2879   :  { %2326 = vrot.lane.b32.xlu1 %v2325_v33, %s3188_s2  ;;  %v2316_v35 = vadd.f32 %v2315_v4, %v3678_v18  ;;  %v2357_v18 = vld [vmem:[%s3852_s15 + $0x18] sm:$0xff] }
0x287a   :  { %2870 = vmatprep.subr.mxu1 %v2357_v18 }
0x287b   :  { %v2547_v36 = vmul.f32 -1.442695, %v2316_v35  ;;  %2871 = vmatpush3.msra.mxu1 %v2357_v18 }
0x287c   :  { %2872 = vmatprep.subr.mxu1 %v2356_v45 }
0x287d   :  { %2985 = vpow2.f32 %v2547_v36  ;;  %2873 = vmatpush3.msra.mxu1 %v2356_v45 }
0x288a   :  { %v2986_v51 = vpop.eup %2985 }
0x288b   :  { %v2320_v39 = vadd.f32 1.0, %v2986_v51 }
0x288d   :  { %2987 = vrcp.f32 %v2320_v39 }
0x289a   :  { %v2988_v40 = vpop.eup %2987 }
0x289b   :  { %v2336_v47 = vsub.f32 1.0, %v2988_v40  ;;  %v2344_v49 = vmul.f32 %v2988_v40, %v2342_v48 }
0x28eb   :  { %v2327_v41 = vpop.permute.xlu1 %2326 }
0x28ec   :  { %v2329_v44 = vmul.f32 %v2988_v40, %v2327_v41 }
0x28ee   :  { %2331 = vrot.lane.b32.xlu0 %v2329_v44, %s3188_s2 }
0x28f2   :  { %2367 = vrot.lane.b32.xlu0 %v3755_v43, %s3189_s3  ;;  %v2355_v43 = vld [vmem:[%s3852_s15 + $0x8] sm:$0xff] }
0x28f3   :  { %2874 = vmatprep.subr.mxu1 %v2355_v43 }
0x28f4   :  { %2875 = vmatpush3.msra.mxu1 %v2355_v43 }
0x28f5   :  { %2876 = vmatprep.subr.mxu1 %v2354_v46 }
0x28f6   :  { %2877 = vmatpush3.msra.mxu1 %v2354_v46 }
0x2960   :  { %v2332_v55 = vpop.permute.xlu0 %2331 }
0x2961   :  { %v2334_v21 = vadd.f32 %v2332_v55, %v3775_v26 }
0x2963   :  { %2989 = vtanh.f32 %v2334_v21 }
0x2964   :  { %v2368_v3 = vpop.permute.xlu0 %2367 }
0x2965   :  { %2878 = vmatprep.mubr.msk.f32.mxu1 %vm259_vm3, %v2368_v3 }
0x2970   :  { %v2990_v37 = vpop.eup %2989 }
0x2971   :  { %2338 = vrot.lane.b32.xlu1 %v2990_v37, %s3189_s3 }
0x29e3   :  { %v2339_v31 = vpop.permute.xlu1 %2338 }
0x29e4   :  { %v2341_v60 = vmul.f32 %v2339_v31, %v2336_v47 }
0x29e6   :  { %v2345_v53 = vadd.f32 %v2344_v49, %v2341_v60 }
0x29e8   :  { %v2353_v26 = vsel %vm2348_vm5, %v2352_v54, %v2345_v53 }
0x29e9   :  { %2369 = vrot.lane.b32.xlu1 %v2353_v26, %s3189_s3 }
0x2a5b   :  { %v2370_v56 = vpop.permute.xlu1 %2369 }
0x2a5c   :  { %2879 = vmatmul.mubr.msk.f32.vlgmr.msra.gmra.mxu1 %vm259_vm3, %v2370_v56  ;;  %vm2479_vm3 = vcmp.eq.s32.totalorder %v3329_v9, 1 }
0x2a5d   :  { %v2551_v15 = vsel %vm2479_vm3, 1.0, %v3186_v11 }
0x2a5e   :  { %v2482_v16 = vadd.f32 1e-09, %v2551_v15 }
0x2b1c   :  { %v2880_v58 = vpop.f32.mrf.mxu1 }
0x2b1d   :  { %v2447_v59 = vadd.f32 %v2880_v58, %v2548_v57 }
0x2b1e   :  { %v2441_v61 = vpop.f32.mrf.mxu1 }
0x2b1f   :  { %v2442_v50 = vadd.f32 %v2548_v57, %v2441_v61  ;;  %v2454_v62 = vsel %vm2453_vm4, %v2447_v59, -inf }
0x2b20   :  { %2455 = vmax.xlane.f32.xlu1 %v2454_v62 }
0x2b21   :  { %v2450_v0 = vsel %vm173_vm0, %v2442_v50, -inf }
0x2b22   :  { %2451 = vmax.xlane.f32.xlu0 %v2450_v0 }
0x2ba9   :  { %v2456_v63 = vpop.xlane.xlu1 %2455 }
0x2baa   :  { %v2458_v7 = vsub.f32 %v2447_v59, %v2456_v63 }
0x2bab   :  { %v2452_v19 = vpop.xlane.xlu0 %2451 }
0x2bac   :  { %v2457_v5 = vsub.f32 %v2442_v50, %v2452_v19  ;;  %v2461_v6 = vmul.f32 1.442695, %v2458_v7 }
0x2bae   :  { %v2459_v20 = vmul.f32 1.442695, %v2457_v5 }
0x2bb0   :  { %2991 = vpow2.f32 %v2459_v20 }
0x2bb1   :  { %2993 = vpow2.f32 %v2461_v6 }
0x2bbd   :  { %v2992_v8 = vpop.eup %2991 }
0x2bbe   :  { %v2463_v10 = vsel %vm173_vm0, %v2992_v8, 0.0  ;;  %v2994_v12 = vpop.eup %2993 }
0x2bbf   :  { %2464 = vadd.xlane.f32.xlu0 %v2463_v10  ;;  %v2466_v13 = vsel %vm2453_vm4, %v2994_v12, 0.0 }
0x2bc3   :  { %2467 = vadd.xlane.f32.xlu0 %v2466_v13 }
0x2c48   :  { %v2465_v14 = vpop.xlane.xlu0 %2464 }
0x2c49   :  { %2995 = vrcp.f32 %v2465_v14 }
0x2c4c   :  { %v2468_v30 = vpop.xlane.xlu0 %2467 }
0x2c4d   :  { %2997 = vrcp.f32 %v2468_v30 }
0x2c4e   :  { %2999 = vlog2.f32 %v2482_v16 }
0x2c56   :  { %v2996_v29 = vpop.eup %2995 }
0x2c57   :  { %v2471_v27 = vmul.f32 %v2996_v29, %v2992_v8 }
0x2c59   :  { %v2473_v42 = vadd.f32 1e-09, %v2471_v27 }
0x2c5a   :  { %v2998_v17 = vpop.eup %2997 }
0x2c5b   :  { %3001 = vlog2.f32 %v2473_v42  ;;  %v2472_v22 = vmul.f32 %v2998_v17, %v2994_v12  ;;  %v3000_v24 = vpop.eup %2999 }
0x2c5c   :  { %v2484_v52 = vmul.f32 0.6931472, %v3000_v24 }
0x2c5d   :  { %v2474_v23 = vadd.f32 1e-09, %v2472_v22 }
0x2c5f   :  { %3003 = vlog2.f32 %v2474_v23 }
0x2c68   :  { %v3002_v1 = vpop.eup %3001 }
0x2c69   :  { %v2476_v25 = vmul.f32 0.6931472, %v3002_v1 }
0x2c6b   :  { %v2487_v38 = vrot.slane %v2476_v25, 6 }
0x2c6c   :  { %v3004_v2 = vpop.eup %3003 }
0x2c6d   :  { %v2492_v9 = vsel %vm2346_vm2, %v2484_v52, %v2487_v38  ;;  %v2478_v28 = vmul.f32 0.6931472, %v3004_v2 }
0x2c6e   :  { %2493 = vst.msk [vmem:[%s3854_s17] sm:$0xff] %vm173_vm0, %v2492_v9 }
0x2c6f   :  { %v2488_v11 = vrot.slane %v2478_v28, 6 }
0x2c71   :  { %v2489_v32 = vsel %vm2346_vm2, %v2487_v38, %v2488_v11 }
0x2c72   :  { %2494 = vst.msk [vmem:[%s3854_s17 + $0x8] sm:$0xff] %vm173_vm0, %v2489_v32 }
0x2c73   :  { %2499 = vsyncpa [#allocation3], 1 }
0x2c74   :  { %2500 = vsyncpa [#allocation5], 1 }
0x2c75   :  { %2501 = vsyncpa [#allocation8], 1 }
0x2c76   :  { %2502 = vsyncpa [#allocation11], 1 }
0x2c77   :  { %2503 = vsyncpa [#allocation14], 1 }

</bundles_post_ra>
